<compile_context>
chip_gen: v7x
topology: tpu7x:2x2x1
jax: 0.10.0
libtpu: 0.0.40
codegen_flags: <defaults>
</compile_context>

<pallas_src>
import numpy as np
import jax
import jax.numpy as jnp
from jax.experimental import pallas as pl
from jax.experimental.pallas import tpu as pltpu

B = 8            # demo batch of SU(3) matrices
HID = 64         # hidden_channels of ComplexDeepTimeSet
HID2 = 2 * HID   # fused real-form channel dim (real || imag) = 128
SUB = 8          # sublanes of batch per tile
LANES = 128      # lanes of batch per tile
TILE = SUB * LANES   # 1024 batch elements per grid step


# ---------------- complex helpers on (real, imag) float32 pairs ----------------

def cmul(ar, ai, br, bi):
    return ar * br - ai * bi, ar * bi + ai * br


def cdivide(ar, ai, br, bi, approx=False):
    # one reciprocal + two multiplies; approx=True uses the cheap EUP reciprocal
    # (only used inside the self-correcting Newton loop).
    d = jnp.maximum(br * br + bi * bi, 1e-30)
    inv = pl.reciprocal(d, approx=True) if approx else 1.0 / d
    return (ar * br + ai * bi) * inv, (ai * br - ar * bi) * inv


def csqrt(zr, zi):
    mag = jnp.sqrt(zr * zr + zi * zi)
    sr = jnp.sqrt(jnp.maximum((mag + zr) * 0.5, 0.0))
    sg = jnp.where(zi >= 0.0, 1.0, -1.0)
    si = sg * jnp.sqrt(jnp.maximum((mag - zr) * 0.5, 0.0))
    return sr, si


def _half_direction(c, s):
    # unit vector at theta/2 given unit vector (c, s) at theta in (-pi, pi]
    c2 = jnp.sqrt(jnp.maximum((1.0 + c) * 0.5, 0.0))
    sg = jnp.where(s >= 0.0, 1.0, -1.0)
    s2 = sg * jnp.sqrt(jnp.maximum((1.0 - c) * 0.5, 0.0))
    return c2, s2


def ccbrt(zr, zi):
    # complex cube root (any branch), trig-free: magnitude via exp(log/3); direction
    # from theta*(1/4+1/16+1/64+1/256) via half-angle identities (~0.4% angle error),
    # then 4 quadratic Newton iterations (error < f32 eps by iteration 3; do NOT drop
    # below 3 iterations -- the approx reciprocals rely on the self-correction).
    mag = jnp.sqrt(zr * zr + zi * zi)
    safe = mag > 1e-24
    m = jnp.where(safe, mag, 1.0)
    inv_m = pl.reciprocal(m, approx=True)
    cr, ci = zr * inv_m, zi * inv_m
    dr, di = 1.0, 0.0
    hc, hs = cr, ci
    for _ in range(4):
        hc, hs = _half_direction(hc, hs)
        hc, hs = _half_direction(hc, hs)
        dr, di = cmul(dr, di, hc, hs)
    root_m = jnp.exp(jnp.log(m) * (1.0 / 3.0))
    wr, wi = root_m * dr, root_m * di
    for _ in range(4):
        w2r, w2i = cmul(wr, wi, wr, wi)
        qr, qi = cdivide(zr, zi, w2r, w2i, approx=True)
        wr = (2.0 * wr + qr) * (1.0 / 3.0)
        wi = (2.0 * wi + qi) * (1.0 / 3.0)
    return jnp.where(safe, wr, 0.0), jnp.where(safe, wi, 0.0)


def cubic_roots(ar, ai, br, bi, cr, ci):
    # roots of monic lambda^3 + a*lambda^2 + b*lambda + c  (complex, element-parallel)
    a2r, a2i = cmul(ar, ai, ar, ai)
    a3r, a3i = cmul(a2r, a2i, ar, ai)
    p_r = br - a2r / 3.0
    p_i = bi - a2i / 3.0
    abr, abi = cmul(ar, ai, br, bi)
    q_r = 2.0 * a3r / 27.0 - abr / 3.0 + cr
    q_i = 2.0 * a3i / 27.0 - abi / 3.0 + ci
    # discriminant (q/2)^2 + (p/3)^3
    hq_r, hq_i = 0.5 * q_r, 0.5 * q_i
    t1r, t1i = cmul(hq_r, hq_i, hq_r, hq_i)
    p3r, p3i = p_r / 3.0, p_i / 3.0
    p3s_r, p3s_i = cmul(p3r, p3i, p3r, p3i)
    p3c_r, p3c_i = cmul(p3s_r, p3s_i, p3r, p3i)
    dr, di = t1r + p3c_r, t1i + p3c_i
    sr, si = csqrt(dr, di)
    # larger-magnitude branch for u^3 (avoid cancellation)
    ua_r, ua_i = -hq_r + sr, -hq_i + si
    ub_r, ub_i = -hq_r - sr, -hq_i - si
    use_a = (ua_r * ua_r + ua_i * ua_i) >= (ub_r * ub_r + ub_i * ub_i)
    u3r = jnp.where(use_a, ua_r, ub_r)
    u3i = jnp.where(use_a, ua_i, ub_i)
    ur, ui = ccbrt(u3r, u3i)
    vr, vi = cdivide(-p3r, -p3i, ur, ui)          # exact divide for the final v
    small_u = (ur * ur + ui * ui) < 1e-20
    ur = jnp.where(small_u, 0.0, ur)
    ui = jnp.where(small_u, 0.0, ui)
    vr = jnp.where(small_u, 0.0, vr)
    vi = jnp.where(small_u, 0.0, vi)
    W_IM = 0.8660254037844386  # sqrt(3)/2 ; omega = -1/2 + i*sqrt(3)/2
    sh_r, sh_i = -ar / 3.0, -ai / 3.0
    l0r, l0i = ur + vr + sh_r, ui + vi + sh_i
    our, oui = cmul(ur, ui, -0.5, W_IM)
    ovr, ovi = cmul(vr, vi, -0.5, -W_IM)
    l1r, l1i = our + ovr + sh_r, oui + ovi + sh_i
    o2ur, o2ui = cmul(ur, ui, -0.5, -W_IM)
    o2vr, o2vi = cmul(vr, vi, -0.5, W_IM)
    l2r, l2i = o2ur + o2vr + sh_r, o2ui + o2vi + sh_i
    return (l0r, l0i), (l1r, l1i), (l2r, l2i)


# ------------------- kernel 1: SU(3) eigenvalues (Cardano) ----------------------
# x block: (18, SUB, 128)  -- 9 real + 9 imag matrix-entry slabs, batch packed over
# sublanes x lanes, so every operand below is a full (8,128) f32 vreg slab.

def su3_eigs_kernel(x_ref, eig_ref):
    def ld(k):
        return x_ref[k], x_ref[9 + k]

    # entries loaded at point of use to keep vreg live ranges short
    x11r, x11i = ld(4)
    x22r, x22i = ld(8)
    x12r, x12i = ld(5)
    x21r, x21i = ld(7)
    ar_, ai_ = cmul(x11r, x11i, x22r, x22i)            # x11*x22
    br_, bi_ = cmul(x12r, x12i, x21r, x21i)            # x12*x21  (also used in tr2)
    m0r, m0i = ar_ - br_, ai_ - bi_
    s11r, s11i = cmul(x11r, x11i, x11r, x11i)
    s22r, s22i = cmul(x22r, x22i, x22r, x22i)

    x10r, x10i = ld(3)
    x20r, x20i = ld(6)
    cr_, ci_ = cmul(x10r, x10i, x22r, x22i)            # x10*x22
    dr_, di_ = cmul(x12r, x12i, x20r, x20i)            # x12*x20
    m1r, m1i = cr_ - dr_, ci_ - di_
    er_, ei_ = cmul(x10r, x10i, x21r, x21i)            # x10*x21
    fr_, fi_ = cmul(x11r, x11i, x20r, x20i)            # x11*x20
    m2r, m2i = er_ - fr_, ei_ - fi_

    x00r, x00i = ld(0)
    x01r, x01i = ld(1)
    x02r, x02i = ld(2)

    # elementary symmetric polynomials of the eigenvalues (char. poly coefficients)
    e1r = x00r + x11r + x22r
    e1i = x00i + x11i + x22i
    s00r, s00i = cmul(x00r, x00i, x00r, x00i)
    p01r, p01i = cmul(x01r, x01i, x10r, x10i)
    p02r, p02i = cmul(x02r, x02i, x20r, x20i)
    tr2r = s00r + s11r + s22r + 2.0 * (p01r + p02r + br_)
    tr2i = s00i + s11i + s22i + 2.0 * (p01i + p02i + bi_)
    e1sq_r, e1sq_i = cmul(e1r, e1i, e1r, e1i)
    e2r = 0.5 * (e1sq_r - tr2r)
    e2i = 0.5 * (e1sq_i - tr2i)
    t0r, t0i = cmul(x00r, x00i, m0r, m0i)
    t1r, t1i = cmul(x01r, x01i, m1r, m1i)
    t2r, t2i = cmul(x02r, x02i, m2r, m2i)
    e3r = t0r - t1r + t2r
    e3i = t0i - t1i + t2i

    # lambda^3 - e1 lambda^2 + e2 lambda - e3 = 0
    (l0r, l0i), (l1r, l1i), (l2r, l2i) = cubic_roots(
        -e1r, -e1i, e2r, e2i, -e3r, -e3i)

    # six full-slab (8,128) unmasked stores
    eig_ref[0] = l0r
    eig_ref[1] = l1r
    eig_ref[2] = l2r
    eig_ref[3] = l0i
    eig_ref[4] = l1i
    eig_ref[5] = l2i


# ---------------- kernel 2: ComplexDeepTimeSet (fused real form) -----------------
# eig block: (6, TILE)  -- rows [l0r,l1r,l2r,l0i,l1i,l2i], batch lane-dense.
# wsm columns: [c_lr, c_li, const1(t folded), b2col, c3(first 8 rows)].

def deepset_kernel(eig_ref, wsm_ref, w2_ref, w3_ref, out_ref):
    t_lanes = eig_ref.shape[1]

    # lane-concatenate the three set elements (tile-aligned, 128-multiple pieces)
    lr_cat = jnp.concatenate(
        [eig_ref[0:1, :], eig_ref[1:2, :], eig_ref[2:3, :]], axis=1)   # (1, 3T)
    li_cat = jnp.concatenate(
        [eig_ref[3:4, :], eig_ref[4:5, :], eig_ref[5:6, :]], axis=1)   # (1, 3T)

    wsm = wsm_ref[...]                                  # (HID2, 8)
    c_lr = wsm[:, 0:1]                                  # multiplies lambda_r
    c_li = wsm[:, 1:2]                                  # multiplies lambda_i
    const1 = wsm[:, 2:3]                                # t-term + bias (folded on host)
    b2col = wsm[:, 3:4]                                 # layer-2 bias
    c3col = wsm[0:8, 4:5]                               # rho t-term + bias (folded)

    # layer 1: one outer-product broadcast over all three set elements (VPU)
    h = jnp.tanh(c_lr * lr_cat + c_li * li_cat + const1)          # (HID2, 3T) f32
    # layer 2: single fused bf16 MXU matmul, f32 accumulation
    g = jnp.dot(w2_ref[...], h.astype(jnp.bfloat16),
                preferred_element_type=jnp.float32) + b2col
    g = jnp.tanh(g)                                               # (HID2, 3T)
    # sum-pool over the set (lane slices at tile-aligned offsets)
    pooled = g[:, 0:t_lanes] + g[:, t_lanes:2 * t_lanes] + g[:, 2 * t_lanes:3 * t_lanes]
    # rho: small f32 matmul + folded t/bias column; rows 2..7 are zero by construction
    out8 = jnp.dot(w3_ref[...], pooled,
                   preferred_element_type=jnp.float32) + c3col    # (8, T)

    out_ref[...] = out8                                 # one unmasked full-block store


# ------------------------------- wrapper ---------------------------------------

def pack_params(t, params):
    (w1r, w1i, b1r, b1i, w2r, w2i, b2r, b2i, w3r, w3i, b3r, b3i) = [
        jnp.asarray(p, jnp.float32) for p in params]
    t = jnp.float32(t)
    zcol = jnp.zeros((HID2,), jnp.float32)
    c_lr = jnp.concatenate([w1r[0], w1i[0]])                     # * lambda_r
    c_li = jnp.concatenate([-w1i[0], w1r[0]])                    # * lambda_i
    const1 = (t * jnp.concatenate([w1r[1], w1i[1]])
              + jnp.concatenate([b1r[0], b1i[0]]))               # t folded in
    b2col = jnp.concatenate([b2r[0], b2i[0]])
    c3 = jnp.zeros((HID2,), jnp.float32)
    c3 = c3.at[0].set(t * w3r[0, HID] + b3r[0, 0])
    c3 = c3.at[1].set(t * w3i[0, HID] + b3i[0, 0])
    wsm = jnp.stack([c_lr, c_li, const1, b2col, c3, zcol, zcol, zcol], axis=1)
    w2blk = jnp.concatenate([
        jnp.concatenate([w2r.T, -w2i.T], axis=1),
        jnp.concatenate([w2i.T, w2r.T], axis=1)], axis=0).astype(jnp.bfloat16)
    w3blk = jnp.zeros((8, HID2), jnp.float32)
    w3blk = w3blk.at[0].set(jnp.concatenate([w3r[0, :HID], -w3i[0, :HID]]))
    w3blk = w3blk.at[1].set(jnp.concatenate([w3i[0, :HID], w3r[0, :HID]]))
    return wsm, w2blk, w3blk


def time_potential_su3(t, x_real, x_imag, params):
    """x_real, x_imag: (B, 3, 3) float32 split of complex SU(3) matrices."""
    nb = x_real.shape[0]
    nbp = pl.cdiv(nb, TILE) * TILE
    # batch on (sublane x lane): (18, nbp/128, 128) = 9 real + 9 imag entry slabs
    x = jnp.concatenate([x_real.reshape(nb, 9).T, x_imag.reshape(nb, 9).T], axis=0)
    x = jnp.pad(x, ((0, 0), (0, nbp - nb)))
    x = x.reshape(18, nbp // LANES, LANES)
    wsm, w2blk, w3blk = pack_params(t, params)

    grid = (nbp // TILE,)

    eig = pl.pallas_call(
        su3_eigs_kernel,
        out_shape=jax.ShapeDtypeStruct((6, nbp // LANES, LANES), jnp.float32),
        grid_spec=pltpu.PrefetchScalarGridSpec(
            num_scalar_prefetch=0,
            grid=grid,
            in_specs=[pl.BlockSpec((18, SUB, LANES), lambda i: (0, i, 0))],
            out_specs=pl.BlockSpec((6, SUB, LANES), lambda i: (0, i, 0)),
        ),
        compiler_params=pltpu.CompilerParams(
            dimension_semantics=("parallel",)),
    )(x)

    eig2 = eig.reshape(6, nbp)   # free row-major collapse: batch becomes lane-dense

    out = pl.pallas_call(
        deepset_kernel,
        out_shape=jax.ShapeDtypeStruct((8, nbp), jnp.float32),
        grid_spec=pltpu.PrefetchScalarGridSpec(
            num_scalar_prefetch=0,
            grid=grid,
            in_specs=[
                pl.BlockSpec((6, TILE), lambda i: (0, i)),        # eigenvalues
                pl.BlockSpec((HID2, 8), lambda i: (0, 0)),        # fused small weights
                pl.BlockSpec((HID2, HID2), lambda i: (0, 0)),     # fused layer-2 (bf16)
                pl.BlockSpec((8, HID2), lambda i: (0, 0)),        # fused rho block
            ],
            out_specs=pl.BlockSpec((8, TILE), lambda i: (0, i)),
        ),
        compiler_params=pltpu.CompilerParams(
            dimension_semantics=("parallel",)),
    )(eig2, wsm, w2blk, w3blk)

    out_r = out[0, :nb].reshape(nb, 1)
    out_i = out[1, :nb].reshape(nb, 1)
    eig_r = eig2[0:3, :nb].T                        # (nb, 3)
    eig_i = eig2[3:6, :nb].T
    return out_r, out_i, eig_r, eig_i


# ------------------------------- reference (host) -------------------------------

def reference_forward(t, U, params):
    w1r, w1i, b1r, b1i, w2r, w2i, b2r, b2i, w3r, w3i, b3r, b3i = [
        np.asarray(p, np.float64) for p in params]
    W1, B1 = w1r + 1j * w1i, b1r + 1j * b1i
    W2, B2 = w2r + 1j * w2i, b2r + 1j * b2i
    W3, B3 = (w3r + 1j * w3i).T, b3r + 1j * b3i          # W3: (HID+1, 1)
    lam = np.linalg.eigvals(U)                            # (B, 3) complex
    feat = np.stack([lam, np.full_like(lam, t)], axis=-1)  # (B, 3, 2)

    def split_tanh(z):
        return np.tanh(z.real) + 1j * np.tanh(z.imag)

    h = split_tanh(feat @ W1 + B1)
    h = split_tanh(h @ W2 + B2)
    pooled = h.sum(axis=1)                                # (B, HID)
    z = np.concatenate(
        [pooled, np.full((U.shape[0], 1), t, np.complex128)], axis=-1)
    out = z @ W3 + B3
    return out.reshape(U.shape[0], 1, 1)


if __name__ == "__main__":
    key = jax.random.PRNGKey(0)
    k_params, k_re, k_im = jax.random.split(key, 3)

    # deterministic ComplexDeepTimeSet(1, 1, hidden_channels=64) parameters
    pk = jax.random.split(k_params, 12)

    def winit(k, shape, fan_in):
        return (1.0 / np.sqrt(fan_in)) * jax.random.normal(k, shape, dtype=jnp.float32)

    params = (
        winit(pk[0], (2, HID), 2), winit(pk[1], (2, HID), 2),
        0.1 * jax.random.normal(pk[2], (1, HID), dtype=jnp.float32),
        0.1 * jax.random.normal(pk[3], (1, HID), dtype=jnp.float32),
        winit(pk[4], (HID, HID), HID), winit(pk[5], (HID, HID), HID),
        0.1 * jax.random.normal(pk[6], (1, HID), dtype=jnp.float32),
        0.1 * jax.random.normal(pk[7], (1, HID), dtype=jnp.float32),
        winit(pk[8], (1, HID + 1), HID + 1), winit(pk[9], (1, HID + 1), HID + 1),
        0.1 * jax.random.normal(pk[10], (1, 1), dtype=jnp.float32),
        0.1 * jax.random.normal(pk[11], (1, 1), dtype=jnp.float32),
    )

    # deterministic SU(3) inputs: QR of random complex matrices, det fixed to 1
    re = np.asarray(jax.random.normal(k_re, (B, 3, 3), dtype=jnp.float32), np.float64)
    im = np.asarray(jax.random.normal(k_im, (B, 3, 3), dtype=jnp.float32), np.float64)
    U = np.empty((B, 3, 3), np.complex128)
    for b in range(B):
        q, _ = np.linalg.qr(re[b] + 1j * im[b])
        d = np.linalg.det(q)
        q = q.copy()
        q[:, 0] = q[:, 0] * np.conj(d)     # det -> |d|^2 = 1
        U[b] = q
    x_real = jnp.asarray(U.real, jnp.float32)
    x_imag = jnp.asarray(U.imag, jnp.float32)

    t_val = float(np.float32(0.7))

    outr, outi, eigr, eigi = time_potential_su3(t_val, x_real, x_imag, params)
    jax.block_until_ready(outr)

    out_c = (np.asarray(outr, np.float64) + 1j * np.asarray(outi, np.float64)).reshape(B, 1, 1)
    eig_c = np.asarray(eigr, np.float64) + 1j * np.asarray(eigi, np.float64)

    # sanity: eigenvalues of unitary matrices lie on the unit circle
    assert np.max(np.abs(np.abs(eig_c) - 1.0)) < 2e-2, "eigenvalue magnitude check failed"

    # end-to-end check vs float64 numpy reference (permutation-invariant pooling makes
    # eigenvalue ordering irrelevant).  Tolerance 2e-2 accounts for the bf16 MXU inputs
    # of the fused layer-2 matmul (f32 accumulation); the Cardano section stays f32.
    Uc = np.asarray(x_real, np.float64) + 1j * np.asarray(x_imag, np.float64)
    ref = reference_forward(t_val, Uc, params)
    assert np.max(np.abs(out_c - ref)) < 2e-2, "output mismatch vs reference"

    print("KERNEL_OK")
</pallas_src>

<mosaic_0001>
module attributes {stable_mosaic.version = 11 : i64} {
  func.func @su3_eigs_kernel(%arg0: i32, %arg1: memref<18x8x128xf32, #tpu.memory_space<vmem>>, %arg2: memref<6x8x128xf32, #tpu.memory_space<vmem>>) attributes {dimension_semantics = [#tpu.dimension_semantics<parallel>], iteration_bounds = array<i64: 1>, scalar_prefetch = 0 : i64, scratch_operands = 0 : i64, tpu.core_type = #tpu.core_type<tc>, window_params = [{transform_indices = @transform_0, window_bounds = array<i64: 18, 8, 128>}, {transform_indices = @transform_1, window_bounds = array<i64: 6, 8, 128>}]} {
    %c4 = arith.constant 4 : index
    %c0 = arith.constant 0 : index
    %c0_0 = arith.constant 0 : index
    %0 = vector.load %arg1[%c4, %c0, %c0_0] : memref<18x8x128xf32, #tpu.memory_space<vmem>>, vector<1x8x128xf32>
    %1 = vector.shape_cast %0 : vector<1x8x128xf32> to vector<8x128xf32>
    %c13 = arith.constant 13 : index
    %c0_1 = arith.constant 0 : index
    %c0_2 = arith.constant 0 : index
    %2 = vector.load %arg1[%c13, %c0_1, %c0_2] : memref<18x8x128xf32, #tpu.memory_space<vmem>>, vector<1x8x128xf32>
    %3 = vector.shape_cast %2 : vector<1x8x128xf32> to vector<8x128xf32>
    %c8 = arith.constant 8 : index
    %c0_3 = arith.constant 0 : index
    %c0_4 = arith.constant 0 : index
    %4 = vector.load %arg1[%c8, %c0_3, %c0_4] : memref<18x8x128xf32, #tpu.memory_space<vmem>>, vector<1x8x128xf32>
    %5 = vector.shape_cast %4 : vector<1x8x128xf32> to vector<8x128xf32>
    %c17 = arith.constant 17 : index
    %c0_5 = arith.constant 0 : index
    %c0_6 = arith.constant 0 : index
    %6 = vector.load %arg1[%c17, %c0_5, %c0_6] : memref<18x8x128xf32, #tpu.memory_space<vmem>>, vector<1x8x128xf32>
    %7 = vector.shape_cast %6 : vector<1x8x128xf32> to vector<8x128xf32>
    %c5 = arith.constant 5 : index
    %c0_7 = arith.constant 0 : index
    %c0_8 = arith.constant 0 : index
    %8 = vector.load %arg1[%c5, %c0_7, %c0_8] : memref<18x8x128xf32, #tpu.memory_space<vmem>>, vector<1x8x128xf32>
    %9 = vector.shape_cast %8 : vector<1x8x128xf32> to vector<8x128xf32>
    %c14 = arith.constant 14 : index
    %c0_9 = arith.constant 0 : index
    %c0_10 = arith.constant 0 : index
    %10 = vector.load %arg1[%c14, %c0_9, %c0_10] : memref<18x8x128xf32, #tpu.memory_space<vmem>>, vector<1x8x128xf32>
    %11 = vector.shape_cast %10 : vector<1x8x128xf32> to vector<8x128xf32>
    %c7 = arith.constant 7 : index
    %c0_11 = arith.constant 0 : index
    %c0_12 = arith.constant 0 : index
    %12 = vector.load %arg1[%c7, %c0_11, %c0_12] : memref<18x8x128xf32, #tpu.memory_space<vmem>>, vector<1x8x128xf32>
    %13 = vector.shape_cast %12 : vector<1x8x128xf32> to vector<8x128xf32>
    %c16 = arith.constant 16 : index
    %c0_13 = arith.constant 0 : index
    %c0_14 = arith.constant 0 : index
    %14 = vector.load %arg1[%c16, %c0_13, %c0_14] : memref<18x8x128xf32, #tpu.memory_space<vmem>>, vector<1x8x128xf32>
    %15 = vector.shape_cast %14 : vector<1x8x128xf32> to vector<8x128xf32>
    %16 = arith.mulf %1, %5 : vector<8x128xf32>
    %17 = arith.mulf %3, %7 : vector<8x128xf32>
    %18 = arith.subf %16, %17 : vector<8x128xf32>
    %19 = arith.mulf %1, %7 : vector<8x128xf32>
    %20 = arith.mulf %3, %5 : vector<8x128xf32>
    %21 = arith.addf %19, %20 : vector<8x128xf32>
    %22 = arith.mulf %9, %13 : vector<8x128xf32>
    %23 = arith.mulf %11, %15 : vector<8x128xf32>
    %24 = arith.subf %22, %23 : vector<8x128xf32>
    %25 = arith.mulf %9, %15 : vector<8x128xf32>
    %26 = arith.mulf %11, %13 : vector<8x128xf32>
    %27 = arith.addf %25, %26 : vector<8x128xf32>
    %28 = arith.subf %18, %24 : vector<8x128xf32>
    %29 = arith.subf %21, %27 : vector<8x128xf32>
    %30 = arith.mulf %1, %1 : vector<8x128xf32>
    %31 = arith.mulf %3, %3 : vector<8x128xf32>
    %32 = arith.subf %30, %31 : vector<8x128xf32>
    %33 = arith.mulf %1, %3 : vector<8x128xf32>
    %34 = arith.mulf %3, %1 : vector<8x128xf32>
    %35 = arith.addf %33, %34 : vector<8x128xf32>
    %36 = arith.mulf %5, %5 : vector<8x128xf32>
    %37 = arith.mulf %7, %7 : vector<8x128xf32>
    %38 = arith.subf %36, %37 : vector<8x128xf32>
    %39 = arith.mulf %5, %7 : vector<8x128xf32>
    %40 = arith.mulf %7, %5 : vector<8x128xf32>
    %41 = arith.addf %39, %40 : vector<8x128xf32>
    %c3 = arith.constant 3 : index
    %c0_15 = arith.constant 0 : index
    %c0_16 = arith.constant 0 : index
    %42 = vector.load %arg1[%c3, %c0_15, %c0_16] : memref<18x8x128xf32, #tpu.memory_space<vmem>>, vector<1x8x128xf32>
    %43 = vector.shape_cast %42 : vector<1x8x128xf32> to vector<8x128xf32>
    %c12 = arith.constant 12 : index
    %c0_17 = arith.constant 0 : index
    %c0_18 = arith.constant 0 : index
    %44 = vector.load %arg1[%c12, %c0_17, %c0_18] : memref<18x8x128xf32, #tpu.memory_space<vmem>>, vector<1x8x128xf32>
    %45 = vector.shape_cast %44 : vector<1x8x128xf32> to vector<8x128xf32>
    %c6 = arith.constant 6 : index
    %c0_19 = arith.constant 0 : index
    %c0_20 = arith.constant 0 : index
    %46 = vector.load %arg1[%c6, %c0_19, %c0_20] : memref<18x8x128xf32, #tpu.memory_space<vmem>>, vector<1x8x128xf32>
    %47 = vector.shape_cast %46 : vector<1x8x128xf32> to vector<8x128xf32>
    %c15 = arith.constant 15 : index
    %c0_21 = arith.constant 0 : index
    %c0_22 = arith.constant 0 : index
    %48 = vector.load %arg1[%c15, %c0_21, %c0_22] : memref<18x8x128xf32, #tpu.memory_space<vmem>>, vector<1x8x128xf32>
    %49 = vector.shape_cast %48 : vector<1x8x128xf32> to vector<8x128xf32>
    %50 = arith.mulf %43, %5 : vector<8x128xf32>
    %51 = arith.mulf %45, %7 : vector<8x128xf32>
    %52 = arith.subf %50, %51 : vector<8x128xf32>
    %53 = arith.mulf %43, %7 : vector<8x128xf32>
    %54 = arith.mulf %45, %5 : vector<8x128xf32>
    %55 = arith.addf %53, %54 : vector<8x128xf32>
    %56 = arith.mulf %9, %47 : vector<8x128xf32>
    %57 = arith.mulf %11, %49 : vector<8x128xf32>
    %58 = arith.subf %56, %57 : vector<8x128xf32>
    %59 = arith.mulf %9, %49 : vector<8x128xf32>
    %60 = arith.mulf %11, %47 : vector<8x128xf32>
    %61 = arith.addf %59, %60 : vector<8x128xf32>
    %62 = arith.subf %52, %58 : vector<8x128xf32>
    %63 = arith.subf %55, %61 : vector<8x128xf32>
    %64 = arith.mulf %43, %13 : vector<8x128xf32>
    %65 = arith.mulf %45, %15 : vector<8x128xf32>
    %66 = arith.subf %64, %65 : vector<8x128xf32>
    %67 = arith.mulf %43, %15 : vector<8x128xf32>
    %68 = arith.mulf %45, %13 : vector<8x128xf32>
    %69 = arith.addf %67, %68 : vector<8x128xf32>
    %70 = arith.mulf %1, %47 : vector<8x128xf32>
    %71 = arith.mulf %3, %49 : vector<8x128xf32>
    %72 = arith.subf %70, %71 : vector<8x128xf32>
    %73 = arith.mulf %1, %49 : vector<8x128xf32>
    %74 = arith.mulf %3, %47 : vector<8x128xf32>
    %75 = arith.addf %73, %74 : vector<8x128xf32>
    %76 = arith.subf %66, %72 : vector<8x128xf32>
    %77 = arith.subf %69, %75 : vector<8x128xf32>
    %c0_23 = arith.constant 0 : index
    %c0_24 = arith.constant 0 : index
    %c0_25 = arith.constant 0 : index
    %78 = vector.load %arg1[%c0_23, %c0_24, %c0_25] : memref<18x8x128xf32, #tpu.memory_space<vmem>>, vector<1x8x128xf32>
    %79 = vector.shape_cast %78 : vector<1x8x128xf32> to vector<8x128xf32>
    %c9 = arith.constant 9 : index
    %c0_26 = arith.constant 0 : index
    %c0_27 = arith.constant 0 : index
    %80 = vector.load %arg1[%c9, %c0_26, %c0_27] : memref<18x8x128xf32, #tpu.memory_space<vmem>>, vector<1x8x128xf32>
    %81 = vector.shape_cast %80 : vector<1x8x128xf32> to vector<8x128xf32>
    %c1 = arith.constant 1 : index
    %c0_28 = arith.constant 0 : index
    %c0_29 = arith.constant 0 : index
    %82 = vector.load %arg1[%c1, %c0_28, %c0_29] : memref<18x8x128xf32, #tpu.memory_space<vmem>>, vector<1x8x128xf32>
    %83 = vector.shape_cast %82 : vector<1x8x128xf32> to vector<8x128xf32>
    %c10 = arith.constant 10 : index
    %c0_30 = arith.constant 0 : index
    %c0_31 = arith.constant 0 : index
    %84 = vector.load %arg1[%c10, %c0_30, %c0_31] : memref<18x8x128xf32, #tpu.memory_space<vmem>>, vector<1x8x128xf32>
    %85 = vector.shape_cast %84 : vector<1x8x128xf32> to vector<8x128xf32>
    %c2 = arith.constant 2 : index
    %c0_32 = arith.constant 0 : index
    %c0_33 = arith.constant 0 : index
    %86 = vector.load %arg1[%c2, %c0_32, %c0_33] : memref<18x8x128xf32, #tpu.memory_space<vmem>>, vector<1x8x128xf32>
    %87 = vector.shape_cast %86 : vector<1x8x128xf32> to vector<8x128xf32>
    %c11 = arith.constant 11 : index
    %c0_34 = arith.constant 0 : index
    %c0_35 = arith.constant 0 : index
    %88 = vector.load %arg1[%c11, %c0_34, %c0_35] : memref<18x8x128xf32, #tpu.memory_space<vmem>>, vector<1x8x128xf32>
    %89 = vector.shape_cast %88 : vector<1x8x128xf32> to vector<8x128xf32>
    %90 = arith.addf %79, %1 : vector<8x128xf32>
    %91 = arith.addf %90, %5 : vector<8x128xf32>
    %92 = arith.addf %81, %3 : vector<8x128xf32>
    %93 = arith.addf %92, %7 : vector<8x128xf32>
    %94 = arith.mulf %79, %79 : vector<8x128xf32>
    %95 = arith.mulf %81, %81 : vector<8x128xf32>
    %96 = arith.subf %94, %95 : vector<8x128xf32>
    %97 = arith.mulf %79, %81 : vector<8x128xf32>
    %98 = arith.mulf %81, %79 : vector<8x128xf32>
    %99 = arith.addf %97, %98 : vector<8x128xf32>
    %100 = arith.mulf %83, %43 : vector<8x128xf32>
    %101 = arith.mulf %85, %45 : vector<8x128xf32>
    %102 = arith.subf %100, %101 : vector<8x128xf32>
    %103 = arith.mulf %83, %45 : vector<8x128xf32>
    %104 = arith.mulf %85, %43 : vector<8x128xf32>
    %105 = arith.addf %103, %104 : vector<8x128xf32>
    %106 = arith.mulf %87, %47 : vector<8x128xf32>
    %107 = arith.mulf %89, %49 : vector<8x128xf32>
    %108 = arith.subf %106, %107 : vector<8x128xf32>
    %109 = arith.mulf %87, %49 : vector<8x128xf32>
    %110 = arith.mulf %89, %47 : vector<8x128xf32>
    %111 = arith.addf %109, %110 : vector<8x128xf32>
    %112 = arith.addf %96, %32 : vector<8x128xf32>
    %113 = arith.addf %112, %38 : vector<8x128xf32>
    %114 = arith.addf %102, %108 : vector<8x128xf32>
    %115 = arith.addf %114, %24 : vector<8x128xf32>
    %cst = arith.constant 2.000000e+00 : f32
    %116 = vector.broadcast %cst : f32 to vector<8x128xf32>
    %117 = arith.mulf %116, %115 : vector<8x128xf32>
    %118 = arith.addf %113, %117 : vector<8x128xf32>
    %119 = arith.addf %99, %35 : vector<8x128xf32>
    %120 = arith.addf %119, %41 : vector<8x128xf32>
    %121 = arith.addf %105, %111 : vector<8x128xf32>
    %122 = arith.addf %121, %27 : vector<8x128xf32>
    %cst_36 = arith.constant 2.000000e+00 : f32
    %123 = vector.broadcast %cst_36 : f32 to vector<8x128xf32>
    %124 = arith.mulf %123, %122 : vector<8x128xf32>
    %125 = arith.addf %120, %124 : vector<8x128xf32>
    %126 = arith.mulf %91, %91 : vector<8x128xf32>
    %127 = arith.mulf %93, %93 : vector<8x128xf32>
    %128 = arith.subf %126, %127 : vector<8x128xf32>
    %129 = arith.mulf %91, %93 : vector<8x128xf32>
    %130 = arith.mulf %93, %91 : vector<8x128xf32>
    %131 = arith.addf %129, %130 : vector<8x128xf32>
    %132 = arith.subf %128, %118 : vector<8x128xf32>
    %cst_37 = arith.constant 5.000000e-01 : f32
    %133 = vector.broadcast %cst_37 : f32 to vector<8x128xf32>
    %134 = arith.mulf %133, %132 : vector<8x128xf32>
    %135 = arith.subf %131, %125 : vector<8x128xf32>
    %cst_38 = arith.constant 5.000000e-01 : f32
    %136 = vector.broadcast %cst_38 : f32 to vector<8x128xf32>
    %137 = arith.mulf %136, %135 : vector<8x128xf32>
    %138 = arith.mulf %79, %28 : vector<8x128xf32>
    %139 = arith.mulf %81, %29 : vector<8x128xf32>
    %140 = arith.subf %138, %139 : vector<8x128xf32>
    %141 = arith.mulf %79, %29 : vector<8x128xf32>
    %142 = arith.mulf %81, %28 : vector<8x128xf32>
    %143 = arith.addf %141, %142 : vector<8x128xf32>
    %144 = arith.mulf %83, %62 : vector<8x128xf32>
    %145 = arith.mulf %85, %63 : vector<8x128xf32>
    %146 = arith.subf %144, %145 : vector<8x128xf32>
    %147 = arith.mulf %83, %63 : vector<8x128xf32>
    %148 = arith.mulf %85, %62 : vector<8x128xf32>
    %149 = arith.addf %147, %148 : vector<8x128xf32>
    %150 = arith.mulf %87, %76 : vector<8x128xf32>
    %151 = arith.mulf %89, %77 : vector<8x128xf32>
    %152 = arith.subf %150, %151 : vector<8x128xf32>
    %153 = arith.mulf %87, %77 : vector<8x128xf32>
    %154 = arith.mulf %89, %76 : vector<8x128xf32>
    %155 = arith.addf %153, %154 : vector<8x128xf32>
    %156 = arith.subf %140, %146 : vector<8x128xf32>
    %157 = arith.addf %156, %152 : vector<8x128xf32>
    %158 = arith.subf %143, %149 : vector<8x128xf32>
    %159 = arith.addf %158, %155 : vector<8x128xf32>
    %cst_39 = arith.constant 0.000000e+00 : f32
    %160 = vector.broadcast %cst_39 : f32 to vector<8x128xf32>
    %161 = arith.subf %160, %91 : vector<8x128xf32>
    %cst_40 = arith.constant 0.000000e+00 : f32
    %162 = vector.broadcast %cst_40 : f32 to vector<8x128xf32>
    %163 = arith.subf %162, %93 : vector<8x128xf32>
    %cst_41 = arith.constant 0.000000e+00 : f32
    %164 = vector.broadcast %cst_41 : f32 to vector<8x128xf32>
    %165 = arith.subf %164, %157 : vector<8x128xf32>
    %cst_42 = arith.constant 0.000000e+00 : f32
    %166 = vector.broadcast %cst_42 : f32 to vector<8x128xf32>
    %167 = arith.subf %166, %159 : vector<8x128xf32>
    %168 = arith.mulf %161, %161 : vector<8x128xf32>
    %169 = arith.mulf %163, %163 : vector<8x128xf32>
    %170 = arith.subf %168, %169 : vector<8x128xf32>
    %171 = arith.mulf %161, %163 : vector<8x128xf32>
    %172 = arith.mulf %163, %161 : vector<8x128xf32>
    %173 = arith.addf %171, %172 : vector<8x128xf32>
    %174 = arith.mulf %170, %161 : vector<8x128xf32>
    %175 = arith.mulf %173, %163 : vector<8x128xf32>
    %176 = arith.subf %174, %175 : vector<8x128xf32>
    %177 = arith.mulf %170, %163 : vector<8x128xf32>
    %178 = arith.mulf %173, %161 : vector<8x128xf32>
    %179 = arith.addf %177, %178 : vector<8x128xf32>
    %cst_43 = arith.constant 3.000000e+00 : f32
    %180 = vector.broadcast %cst_43 : f32 to vector<8x128xf32>
    %181 = arith.divf %170, %180 : vector<8x128xf32>
    %182 = arith.subf %134, %181 : vector<8x128xf32>
    %cst_44 = arith.constant 3.000000e+00 : f32
    %183 = vector.broadcast %cst_44 : f32 to vector<8x128xf32>
    %184 = arith.divf %173, %183 : vector<8x128xf32>
    %185 = arith.subf %137, %184 : vector<8x128xf32>
    %186 = arith.mulf %161, %134 : vector<8x128xf32>
    %187 = arith.mulf %163, %137 : vector<8x128xf32>
    %188 = arith.subf %186, %187 : vector<8x128xf32>
    %189 = arith.mulf %161, %137 : vector<8x128xf32>
    %190 = arith.mulf %163, %134 : vector<8x128xf32>
    %191 = arith.addf %189, %190 : vector<8x128xf32>
    %cst_45 = arith.constant 2.000000e+00 : f32
    %192 = vector.broadcast %cst_45 : f32 to vector<8x128xf32>
    %193 = arith.mulf %192, %176 : vector<8x128xf32>
    %cst_46 = arith.constant 2.700000e+01 : f32
    %194 = vector.broadcast %cst_46 : f32 to vector<8x128xf32>
    %195 = arith.divf %193, %194 : vector<8x128xf32>
    %cst_47 = arith.constant 3.000000e+00 : f32
    %196 = vector.broadcast %cst_47 : f32 to vector<8x128xf32>
    %197 = arith.divf %188, %196 : vector<8x128xf32>
    %198 = arith.subf %195, %197 : vector<8x128xf32>
    %199 = arith.addf %198, %165 : vector<8x128xf32>
    %cst_48 = arith.constant 2.000000e+00 : f32
    %200 = vector.broadcast %cst_48 : f32 to vector<8x128xf32>
    %201 = arith.mulf %200, %179 : vector<8x128xf32>
    %cst_49 = arith.constant 2.700000e+01 : f32
    %202 = vector.broadcast %cst_49 : f32 to vector<8x128xf32>
    %203 = arith.divf %201, %202 : vector<8x128xf32>
    %cst_50 = arith.constant 3.000000e+00 : f32
    %204 = vector.broadcast %cst_50 : f32 to vector<8x128xf32>
    %205 = arith.divf %191, %204 : vector<8x128xf32>
    %206 = arith.subf %203, %205 : vector<8x128xf32>
    %207 = arith.addf %206, %167 : vector<8x128xf32>
    %cst_51 = arith.constant 5.000000e-01 : f32
    %208 = vector.broadcast %cst_51 : f32 to vector<8x128xf32>
    %209 = arith.mulf %208, %199 : vector<8x128xf32>
    %cst_52 = arith.constant 5.000000e-01 : f32
    %210 = vector.broadcast %cst_52 : f32 to vector<8x128xf32>
    %211 = arith.mulf %210, %207 : vector<8x128xf32>
    %212 = arith.mulf %209, %209 : vector<8x128xf32>
    %213 = arith.mulf %211, %211 : vector<8x128xf32>
    %214 = arith.subf %212, %213 : vector<8x128xf32>
    %215 = arith.mulf %209, %211 : vector<8x128xf32>
    %216 = arith.mulf %211, %209 : vector<8x128xf32>
    %217 = arith.addf %215, %216 : vector<8x128xf32>
    %cst_53 = arith.constant 3.000000e+00 : f32
    %218 = vector.broadcast %cst_53 : f32 to vector<8x128xf32>
    %219 = arith.divf %182, %218 : vector<8x128xf32>
    %cst_54 = arith.constant 3.000000e+00 : f32
    %220 = vector.broadcast %cst_54 : f32 to vector<8x128xf32>
    %221 = arith.divf %185, %220 : vector<8x128xf32>
    %222 = arith.mulf %219, %219 : vector<8x128xf32>
    %223 = arith.mulf %221, %221 : vector<8x128xf32>
    %224 = arith.subf %222, %223 : vector<8x128xf32>
    %225 = arith.mulf %219, %221 : vector<8x128xf32>
    %226 = arith.mulf %221, %219 : vector<8x128xf32>
    %227 = arith.addf %225, %226 : vector<8x128xf32>
    %228 = arith.mulf %224, %219 : vector<8x128xf32>
    %229 = arith.mulf %227, %221 : vector<8x128xf32>
    %230 = arith.subf %228, %229 : vector<8x128xf32>
    %231 = arith.mulf %224, %221 : vector<8x128xf32>
    %232 = arith.mulf %227, %219 : vector<8x128xf32>
    %233 = arith.addf %231, %232 : vector<8x128xf32>
    %234 = arith.addf %214, %230 : vector<8x128xf32>
    %235 = arith.addf %217, %233 : vector<8x128xf32>
    %236 = arith.mulf %234, %234 : vector<8x128xf32>
    %237 = arith.mulf %235, %235 : vector<8x128xf32>
    %238 = arith.addf %236, %237 : vector<8x128xf32>
    %239 = math.sqrt %238 : vector<8x128xf32>
    %240 = arith.addf %239, %234 : vector<8x128xf32>
    %cst_55 = arith.constant 5.000000e-01 : f32
    %241 = vector.broadcast %cst_55 : f32 to vector<8x128xf32>
    %242 = arith.mulf %240, %241 : vector<8x128xf32>
    %cst_56 = arith.constant 0.000000e+00 : f32
    %243 = vector.broadcast %cst_56 : f32 to vector<8x128xf32>
    %244 = arith.maximumf %242, %243 : vector<8x128xf32>
    %245 = math.sqrt %244 : vector<8x128xf32>
    %cst_57 = arith.constant 0.000000e+00 : f32
    %246 = vector.broadcast %cst_57 : f32 to vector<8x128xf32>
    %247 = arith.cmpf oge, %235, %246 : vector<8x128xf32>
    %cst_58 = arith.constant 1.000000e+00 : f32
    %cst_59 = arith.constant -1.000000e+00 : f32
    %248 = vector.broadcast %cst_58 : f32 to vector<8x128xf32>
    %249 = vector.broadcast %cst_59 : f32 to vector<8x128xf32>
    %250 = arith.select %247, %248, %249 : vector<8x128xi1>, vector<8x128xf32>
    %251 = arith.subf %239, %234 : vector<8x128xf32>
    %cst_60 = arith.constant 5.000000e-01 : f32
    %252 = vector.broadcast %cst_60 : f32 to vector<8x128xf32>
    %253 = arith.mulf %251, %252 : vector<8x128xf32>
    %cst_61 = arith.constant 0.000000e+00 : f32
    %254 = vector.broadcast %cst_61 : f32 to vector<8x128xf32>
    %255 = arith.maximumf %253, %254 : vector<8x128xf32>
    %256 = math.sqrt %255 : vector<8x128xf32>
    %257 = arith.mulf %250, %256 : vector<8x128xf32>
    %cst_62 = arith.constant 0.000000e+00 : f32
    %258 = vector.broadcast %cst_62 : f32 to vector<8x128xf32>
    %259 = arith.subf %258, %209 : vector<8x128xf32>
    %260 = arith.addf %259, %245 : vector<8x128xf32>
    %cst_63 = arith.constant 0.000000e+00 : f32
    %261 = vector.broadcast %cst_63 : f32 to vector<8x128xf32>
    %262 = arith.subf %261, %211 : vector<8x128xf32>
    %263 = arith.addf %262, %257 : vector<8x128xf32>
    %cst_64 = arith.constant 0.000000e+00 : f32
    %264 = vector.broadcast %cst_64 : f32 to vector<8x128xf32>
    %265 = arith.subf %264, %209 : vector<8x128xf32>
    %266 = arith.subf %265, %245 : vector<8x128xf32>
    %cst_65 = arith.constant 0.000000e+00 : f32
    %267 = vector.broadcast %cst_65 : f32 to vector<8x128xf32>
    %268 = arith.subf %267, %211 : vector<8x128xf32>
    %269 = arith.subf %268, %257 : vector<8x128xf32>
    %270 = arith.mulf %260, %260 : vector<8x128xf32>
    %271 = arith.mulf %263, %263 : vector<8x128xf32>
    %272 = arith.addf %270, %271 : vector<8x128xf32>
    %273 = arith.mulf %266, %266 : vector<8x128xf32>
    %274 = arith.mulf %269, %269 : vector<8x128xf32>
    %275 = arith.addf %273, %274 : vector<8x128xf32>
    %276 = arith.cmpf oge, %272, %275 : vector<8x128xf32>
    %277 = arith.select %276, %260, %266 : vector<8x128xi1>, vector<8x128xf32>
    %278 = arith.select %276, %263, %269 : vector<8x128xi1>, vector<8x128xf32>
    %279 = arith.mulf %277, %277 : vector<8x128xf32>
    %280 = arith.mulf %278, %278 : vector<8x128xf32>
    %281 = arith.addf %279, %280 : vector<8x128xf32>
    %282 = math.sqrt %281 : vector<8x128xf32>
    %cst_66 = arith.constant 1.000000e-24 : f32
    %283 = vector.broadcast %cst_66 : f32 to vector<8x128xf32>
    %284 = arith.cmpf ogt, %282, %283 : vector<8x128xf32>
    %cst_67 = arith.constant 1.000000e+00 : f32
    %285 = vector.broadcast %cst_67 : f32 to vector<8x128xf32>
    %286 = arith.select %284, %282, %285 : vector<8x128xi1>, vector<8x128xf32>
    %287 = tpu.reciprocal %286 {approx = true} : vector<8x128xf32> -> vector<8x128xf32>
    %288 = arith.mulf %277, %287 : vector<8x128xf32>
    %289 = arith.mulf %278, %287 : vector<8x128xf32>
    %cst_68 = arith.constant 1.000000e+00 : f32
    %290 = vector.broadcast %cst_68 : f32 to vector<8x128xf32>
    %291 = arith.addf %290, %288 : vector<8x128xf32>
    %cst_69 = arith.constant 5.000000e-01 : f32
    %292 = vector.broadcast %cst_69 : f32 to vector<8x128xf32>
    %293 = arith.mulf %291, %292 : vector<8x128xf32>
    %cst_70 = arith.constant 0.000000e+00 : f32
    %294 = vector.broadcast %cst_70 : f32 to vector<8x128xf32>
    %295 = arith.maximumf %293, %294 : vector<8x128xf32>
    %296 = math.sqrt %295 : vector<8x128xf32>
    %cst_71 = arith.constant 0.000000e+00 : f32
    %297 = vector.broadcast %cst_71 : f32 to vector<8x128xf32>
    %298 = arith.cmpf oge, %289, %297 : vector<8x128xf32>
    %cst_72 = arith.constant 1.000000e+00 : f32
    %cst_73 = arith.constant -1.000000e+00 : f32
    %299 = vector.broadcast %cst_72 : f32 to vector<8x128xf32>
    %300 = vector.broadcast %cst_73 : f32 to vector<8x128xf32>
    %301 = arith.select %298, %299, %300 : vector<8x128xi1>, vector<8x128xf32>
    %cst_74 = arith.constant 1.000000e+00 : f32
    %302 = vector.broadcast %cst_74 : f32 to vector<8x128xf32>
    %303 = arith.subf %302, %288 : vector<8x128xf32>
    %cst_75 = arith.constant 5.000000e-01 : f32
    %304 = vector.broadcast %cst_75 : f32 to vector<8x128xf32>
    %305 = arith.mulf %303, %304 : vector<8x128xf32>
    %cst_76 = arith.constant 0.000000e+00 : f32
    %306 = vector.broadcast %cst_76 : f32 to vector<8x128xf32>
    %307 = arith.maximumf %305, %306 : vector<8x128xf32>
    %308 = math.sqrt %307 : vector<8x128xf32>
    %309 = arith.mulf %301, %308 : vector<8x128xf32>
    %cst_77 = arith.constant 1.000000e+00 : f32
    %310 = vector.broadcast %cst_77 : f32 to vector<8x128xf32>
    %311 = arith.addf %310, %296 : vector<8x128xf32>
    %cst_78 = arith.constant 5.000000e-01 : f32
    %312 = vector.broadcast %cst_78 : f32 to vector<8x128xf32>
    %313 = arith.mulf %311, %312 : vector<8x128xf32>
    %cst_79 = arith.constant 0.000000e+00 : f32
    %314 = vector.broadcast %cst_79 : f32 to vector<8x128xf32>
    %315 = arith.maximumf %313, %314 : vector<8x128xf32>
    %316 = math.sqrt %315 : vector<8x128xf32>
    %cst_80 = arith.constant 0.000000e+00 : f32
    %317 = vector.broadcast %cst_80 : f32 to vector<8x128xf32>
    %318 = arith.cmpf oge, %309, %317 : vector<8x128xf32>
    %cst_81 = arith.constant 1.000000e+00 : f32
    %cst_82 = arith.constant -1.000000e+00 : f32
    %319 = vector.broadcast %cst_81 : f32 to vector<8x128xf32>
    %320 = vector.broadcast %cst_82 : f32 to vector<8x128xf32>
    %321 = arith.select %318, %319, %320 : vector<8x128xi1>, vector<8x128xf32>
    %cst_83 = arith.constant 1.000000e+00 : f32
    %322 = vector.broadcast %cst_83 : f32 to vector<8x128xf32>
    %323 = arith.subf %322, %296 : vector<8x128xf32>
    %cst_84 = arith.constant 5.000000e-01 : f32
    %324 = vector.broadcast %cst_84 : f32 to vector<8x128xf32>
    %325 = arith.mulf %323, %324 : vector<8x128xf32>
    %cst_85 = arith.constant 0.000000e+00 : f32
    %326 = vector.broadcast %cst_85 : f32 to vector<8x128xf32>
    %327 = arith.maximumf %325, %326 : vector<8x128xf32>
    %328 = math.sqrt %327 : vector<8x128xf32>
    %329 = arith.mulf %321, %328 : vector<8x128xf32>
    %cst_86 = arith.constant 1.000000e+00 : f32
    %330 = vector.broadcast %cst_86 : f32 to vector<8x128xf32>
    %331 = arith.mulf %330, %316 : vector<8x128xf32>
    %cst_87 = arith.constant 0.000000e+00 : f32
    %332 = vector.broadcast %cst_87 : f32 to vector<8x128xf32>
    %333 = arith.mulf %332, %329 : vector<8x128xf32>
    %334 = arith.subf %331, %333 : vector<8x128xf32>
    %cst_88 = arith.constant 1.000000e+00 : f32
    %335 = vector.broadcast %cst_88 : f32 to vector<8x128xf32>
    %336 = arith.mulf %335, %329 : vector<8x128xf32>
    %cst_89 = arith.constant 0.000000e+00 : f32
    %337 = vector.broadcast %cst_89 : f32 to vector<8x128xf32>
    %338 = arith.mulf %337, %316 : vector<8x128xf32>
    %339 = arith.addf %336, %338 : vector<8x128xf32>
    %cst_90 = arith.constant 1.000000e+00 : f32
    %340 = vector.broadcast %cst_90 : f32 to vector<8x128xf32>
    %341 = arith.addf %340, %316 : vector<8x128xf32>
    %cst_91 = arith.constant 5.000000e-01 : f32
    %342 = vector.broadcast %cst_91 : f32 to vector<8x128xf32>
    %343 = arith.mulf %341, %342 : vector<8x128xf32>
    %cst_92 = arith.constant 0.000000e+00 : f32
    %344 = vector.broadcast %cst_92 : f32 to vector<8x128xf32>
    %345 = arith.maximumf %343, %344 : vector<8x128xf32>
    %346 = math.sqrt %345 : vector<8x128xf32>
    %cst_93 = arith.constant 0.000000e+00 : f32
    %347 = vector.broadcast %cst_93 : f32 to vector<8x128xf32>
    %348 = arith.cmpf oge, %329, %347 : vector<8x128xf32>
    %cst_94 = arith.constant 1.000000e+00 : f32
    %cst_95 = arith.constant -1.000000e+00 : f32
    %349 = vector.broadcast %cst_94 : f32 to vector<8x128xf32>
    %350 = vector.broadcast %cst_95 : f32 to vector<8x128xf32>
    %351 = arith.select %348, %349, %350 : vector<8x128xi1>, vector<8x128xf32>
    %cst_96 = arith.constant 1.000000e+00 : f32
    %352 = vector.broadcast %cst_96 : f32 to vector<8x128xf32>
    %353 = arith.subf %352, %316 : vector<8x128xf32>
    %cst_97 = arith.constant 5.000000e-01 : f32
    %354 = vector.broadcast %cst_97 : f32 to vector<8x128xf32>
    %355 = arith.mulf %353, %354 : vector<8x128xf32>
    %cst_98 = arith.constant 0.000000e+00 : f32
    %356 = vector.broadcast %cst_98 : f32 to vector<8x128xf32>
    %357 = arith.maximumf %355, %356 : vector<8x128xf32>
    %358 = math.sqrt %357 : vector<8x128xf32>
    %359 = arith.mulf %351, %358 : vector<8x128xf32>
    %cst_99 = arith.constant 1.000000e+00 : f32
    %360 = vector.broadcast %cst_99 : f32 to vector<8x128xf32>
    %361 = arith.addf %360, %346 : vector<8x128xf32>
    %cst_100 = arith.constant 5.000000e-01 : f32
    %362 = vector.broadcast %cst_100 : f32 to vector<8x128xf32>
    %363 = arith.mulf %361, %362 : vector<8x128xf32>
    %cst_101 = arith.constant 0.000000e+00 : f32
    %364 = vector.broadcast %cst_101 : f32 to vector<8x128xf32>
    %365 = arith.maximumf %363, %364 : vector<8x128xf32>
    %366 = math.sqrt %365 : vector<8x128xf32>
    %cst_102 = arith.constant 0.000000e+00 : f32
    %367 = vector.broadcast %cst_102 : f32 to vector<8x128xf32>
    %368 = arith.cmpf oge, %359, %367 : vector<8x128xf32>
    %cst_103 = arith.constant 1.000000e+00 : f32
    %cst_104 = arith.constant -1.000000e+00 : f32
    %369 = vector.broadcast %cst_103 : f32 to vector<8x128xf32>
    %370 = vector.broadcast %cst_104 : f32 to vector<8x128xf32>
    %371 = arith.select %368, %369, %370 : vector<8x128xi1>, vector<8x128xf32>
    %cst_105 = arith.constant 1.000000e+00 : f32
    %372 = vector.broadcast %cst_105 : f32 to vector<8x128xf32>
    %373 = arith.subf %372, %346 : vector<8x128xf32>
    %cst_106 = arith.constant 5.000000e-01 : f32
    %374 = vector.broadcast %cst_106 : f32 to vector<8x128xf32>
    %375 = arith.mulf %373, %374 : vector<8x128xf32>
    %cst_107 = arith.constant 0.000000e+00 : f32
    %376 = vector.broadcast %cst_107 : f32 to vector<8x128xf32>
    %377 = arith.maximumf %375, %376 : vector<8x128xf32>
    %378 = math.sqrt %377 : vector<8x128xf32>
    %379 = arith.mulf %371, %378 : vector<8x128xf32>
    %380 = arith.mulf %334, %366 : vector<8x128xf32>
    %381 = arith.mulf %339, %379 : vector<8x128xf32>
    %382 = arith.subf %380, %381 : vector<8x128xf32>
    %383 = arith.mulf %334, %379 : vector<8x128xf32>
    %384 = arith.mulf %339, %366 : vector<8x128xf32>
    %385 = arith.addf %383, %384 : vector<8x128xf32>
    %cst_108 = arith.constant 1.000000e+00 : f32
    %386 = vector.broadcast %cst_108 : f32 to vector<8x128xf32>
    %387 = arith.addf %386, %366 : vector<8x128xf32>
    %cst_109 = arith.constant 5.000000e-01 : f32
    %388 = vector.broadcast %cst_109 : f32 to vector<8x128xf32>
    %389 = arith.mulf %387, %388 : vector<8x128xf32>
    %cst_110 = arith.constant 0.000000e+00 : f32
    %390 = vector.broadcast %cst_110 : f32 to vector<8x128xf32>
    %391 = arith.maximumf %389, %390 : vector<8x128xf32>
    %392 = math.sqrt %391 : vector<8x128xf32>
    %cst_111 = arith.constant 0.000000e+00 : f32
    %393 = vector.broadcast %cst_111 : f32 to vector<8x128xf32>
    %394 = arith.cmpf oge, %379, %393 : vector<8x128xf32>
    %cst_112 = arith.constant 1.000000e+00 : f32
    %cst_113 = arith.constant -1.000000e+00 : f32
    %395 = vector.broadcast %cst_112 : f32 to vector<8x128xf32>
    %396 = vector.broadcast %cst_113 : f32 to vector<8x128xf32>
    %397 = arith.select %394, %395, %396 : vector<8x128xi1>, vector<8x128xf32>
    %cst_114 = arith.constant 1.000000e+00 : f32
    %398 = vector.broadcast %cst_114 : f32 to vector<8x128xf32>
    %399 = arith.subf %398, %366 : vector<8x128xf32>
    %cst_115 = arith.constant 5.000000e-01 : f32
    %400 = vector.broadcast %cst_115 : f32 to vector<8x128xf32>
    %401 = arith.mulf %399, %400 : vector<8x128xf32>
    %cst_116 = arith.constant 0.000000e+00 : f32
    %402 = vector.broadcast %cst_116 : f32 to vector<8x128xf32>
    %403 = arith.maximumf %401, %402 : vector<8x128xf32>
    %404 = math.sqrt %403 : vector<8x128xf32>
    %405 = arith.mulf %397, %404 : vector<8x128xf32>
    %cst_117 = arith.constant 1.000000e+00 : f32
    %406 = vector.broadcast %cst_117 : f32 to vector<8x128xf32>
    %407 = arith.addf %406, %392 : vector<8x128xf32>
    %cst_118 = arith.constant 5.000000e-01 : f32
    %408 = vector.broadcast %cst_118 : f32 to vector<8x128xf32>
    %409 = arith.mulf %407, %408 : vector<8x128xf32>
    %cst_119 = arith.constant 0.000000e+00 : f32
    %410 = vector.broadcast %cst_119 : f32 to vector<8x128xf32>
    %411 = arith.maximumf %409, %410 : vector<8x128xf32>
    %412 = math.sqrt %411 : vector<8x128xf32>
    %cst_120 = arith.constant 0.000000e+00 : f32
    %413 = vector.broadcast %cst_120 : f32 to vector<8x128xf32>
    %414 = arith.cmpf oge, %405, %413 : vector<8x128xf32>
    %cst_121 = arith.constant 1.000000e+00 : f32
    %cst_122 = arith.constant -1.000000e+00 : f32
    %415 = vector.broadcast %cst_121 : f32 to vector<8x128xf32>
    %416 = vector.broadcast %cst_122 : f32 to vector<8x128xf32>
    %417 = arith.select %414, %415, %416 : vector<8x128xi1>, vector<8x128xf32>
    %cst_123 = arith.constant 1.000000e+00 : f32
    %418 = vector.broadcast %cst_123 : f32 to vector<8x128xf32>
    %419 = arith.subf %418, %392 : vector<8x128xf32>
    %cst_124 = arith.constant 5.000000e-01 : f32
    %420 = vector.broadcast %cst_124 : f32 to vector<8x128xf32>
    %421 = arith.mulf %419, %420 : vector<8x128xf32>
    %cst_125 = arith.constant 0.000000e+00 : f32
    %422 = vector.broadcast %cst_125 : f32 to vector<8x128xf32>
    %423 = arith.maximumf %421, %422 : vector<8x128xf32>
    %424 = math.sqrt %423 : vector<8x128xf32>
    %425 = arith.mulf %417, %424 : vector<8x128xf32>
    %426 = arith.mulf %382, %412 : vector<8x128xf32>
    %427 = arith.mulf %385, %425 : vector<8x128xf32>
    %428 = arith.subf %426, %427 : vector<8x128xf32>
    %429 = arith.mulf %382, %425 : vector<8x128xf32>
    %430 = arith.mulf %385, %412 : vector<8x128xf32>
    %431 = arith.addf %429, %430 : vector<8x128xf32>
    %cst_126 = arith.constant 1.000000e+00 : f32
    %432 = vector.broadcast %cst_126 : f32 to vector<8x128xf32>
    %433 = arith.addf %432, %412 : vector<8x128xf32>
    %cst_127 = arith.constant 5.000000e-01 : f32
    %434 = vector.broadcast %cst_127 : f32 to vector<8x128xf32>
    %435 = arith.mulf %433, %434 : vector<8x128xf32>
    %cst_128 = arith.constant 0.000000e+00 : f32
    %436 = vector.broadcast %cst_128 : f32 to vector<8x128xf32>
    %437 = arith.maximumf %435, %436 : vector<8x128xf32>
    %438 = math.sqrt %437 : vector<8x128xf32>
    %cst_129 = arith.constant 0.000000e+00 : f32
    %439 = vector.broadcast %cst_129 : f32 to vector<8x128xf32>
    %440 = arith.cmpf oge, %425, %439 : vector<8x128xf32>
    %cst_130 = arith.constant 1.000000e+00 : f32
    %cst_131 = arith.constant -1.000000e+00 : f32
    %441 = vector.broadcast %cst_130 : f32 to vector<8x128xf32>
    %442 = vector.broadcast %cst_131 : f32 to vector<8x128xf32>
    %443 = arith.select %440, %441, %442 : vector<8x128xi1>, vector<8x128xf32>
    %cst_132 = arith.constant 1.000000e+00 : f32
    %444 = vector.broadcast %cst_132 : f32 to vector<8x128xf32>
    %445 = arith.subf %444, %412 : vector<8x128xf32>
    %cst_133 = arith.constant 5.000000e-01 : f32
    %446 = vector.broadcast %cst_133 : f32 to vector<8x128xf32>
    %447 = arith.mulf %445, %446 : vector<8x128xf32>
    %cst_134 = arith.constant 0.000000e+00 : f32
    %448 = vector.broadcast %cst_134 : f32 to vector<8x128xf32>
    %449 = arith.maximumf %447, %448 : vector<8x128xf32>
    %450 = math.sqrt %449 : vector<8x128xf32>
    %451 = arith.mulf %443, %450 : vector<8x128xf32>
    %cst_135 = arith.constant 1.000000e+00 : f32
    %452 = vector.broadcast %cst_135 : f32 to vector<8x128xf32>
    %453 = arith.addf %452, %438 : vector<8x128xf32>
    %cst_136 = arith.constant 5.000000e-01 : f32
    %454 = vector.broadcast %cst_136 : f32 to vector<8x128xf32>
    %455 = arith.mulf %453, %454 : vector<8x128xf32>
    %cst_137 = arith.constant 0.000000e+00 : f32
    %456 = vector.broadcast %cst_137 : f32 to vector<8x128xf32>
    %457 = arith.maximumf %455, %456 : vector<8x128xf32>
    %458 = math.sqrt %457 : vector<8x128xf32>
    %cst_138 = arith.constant 0.000000e+00 : f32
    %459 = vector.broadcast %cst_138 : f32 to vector<8x128xf32>
    %460 = arith.cmpf oge, %451, %459 : vector<8x128xf32>
    %cst_139 = arith.constant 1.000000e+00 : f32
    %cst_140 = arith.constant -1.000000e+00 : f32
    %461 = vector.broadcast %cst_139 : f32 to vector<8x128xf32>
    %462 = vector.broadcast %cst_140 : f32 to vector<8x128xf32>
    %463 = arith.select %460, %461, %462 : vector<8x128xi1>, vector<8x128xf32>
    %cst_141 = arith.constant 1.000000e+00 : f32
    %464 = vector.broadcast %cst_141 : f32 to vector<8x128xf32>
    %465 = arith.subf %464, %438 : vector<8x128xf32>
    %cst_142 = arith.constant 5.000000e-01 : f32
    %466 = vector.broadcast %cst_142 : f32 to vector<8x128xf32>
    %467 = arith.mulf %465, %466 : vector<8x128xf32>
    %cst_143 = arith.constant 0.000000e+00 : f32
    %468 = vector.broadcast %cst_143 : f32 to vector<8x128xf32>
    %469 = arith.maximumf %467, %468 : vector<8x128xf32>
    %470 = math.sqrt %469 : vector<8x128xf32>
    %471 = arith.mulf %463, %470 : vector<8x128xf32>
    %472 = arith.mulf %428, %458 : vector<8x128xf32>
    %473 = arith.mulf %431, %471 : vector<8x128xf32>
    %474 = arith.subf %472, %473 : vector<8x128xf32>
    %475 = arith.mulf %428, %471 : vector<8x128xf32>
    %476 = arith.mulf %431, %458 : vector<8x128xf32>
    %477 = arith.addf %475, %476 : vector<8x128xf32>
    %478 = math.log %286 : vector<8x128xf32>
    %cst_144 = arith.constant 0.333333343 : f32
    %479 = vector.broadcast %cst_144 : f32 to vector<8x128xf32>
    %480 = arith.mulf %478, %479 : vector<8x128xf32>
    %481 = math.exp %480 : vector<8x128xf32>
    %482 = arith.mulf %481, %474 : vector<8x128xf32>
    %483 = arith.mulf %481, %477 : vector<8x128xf32>
    %484 = arith.mulf %482, %482 : vector<8x128xf32>
    %485 = arith.mulf %483, %483 : vector<8x128xf32>
    %486 = arith.subf %484, %485 : vector<8x128xf32>
    %487 = arith.mulf %482, %483 : vector<8x128xf32>
    %488 = arith.mulf %483, %482 : vector<8x128xf32>
    %489 = arith.addf %487, %488 : vector<8x128xf32>
    %490 = arith.mulf %486, %486 : vector<8x128xf32>
    %491 = arith.mulf %489, %489 : vector<8x128xf32>
    %492 = arith.addf %490, %491 : vector<8x128xf32>
    %cst_145 = arith.constant 1.000000e-30 : f32
    %493 = vector.broadcast %cst_145 : f32 to vector<8x128xf32>
    %494 = arith.maximumf %492, %493 : vector<8x128xf32>
    %495 = tpu.reciprocal %494 {approx = true} : vector<8x128xf32> -> vector<8x128xf32>
    %496 = arith.mulf %277, %486 : vector<8x128xf32>
    %497 = arith.mulf %278, %489 : vector<8x128xf32>
    %498 = arith.addf %496, %497 : vector<8x128xf32>
    %499 = arith.mulf %498, %495 : vector<8x128xf32>
    %500 = arith.mulf %278, %486 : vector<8x128xf32>
    %501 = arith.mulf %277, %489 : vector<8x128xf32>
    %502 = arith.subf %500, %501 : vector<8x128xf32>
    %503 = arith.mulf %502, %495 : vector<8x128xf32>
    %cst_146 = arith.constant 2.000000e+00 : f32
    %504 = vector.broadcast %cst_146 : f32 to vector<8x128xf32>
    %505 = arith.mulf %504, %482 : vector<8x128xf32>
    %506 = arith.addf %505, %499 : vector<8x128xf32>
    %cst_147 = arith.constant 0.333333343 : f32
    %507 = vector.broadcast %cst_147 : f32 to vector<8x128xf32>
    %508 = arith.mulf %506, %507 : vector<8x128xf32>
    %cst_148 = arith.constant 2.000000e+00 : f32
    %509 = vector.broadcast %cst_148 : f32 to vector<8x128xf32>
    %510 = arith.mulf %509, %483 : vector<8x128xf32>
    %511 = arith.addf %510, %503 : vector<8x128xf32>
    %cst_149 = arith.constant 0.333333343 : f32
    %512 = vector.broadcast %cst_149 : f32 to vector<8x128xf32>
    %513 = arith.mulf %511, %512 : vector<8x128xf32>
    %514 = arith.mulf %508, %508 : vector<8x128xf32>
    %515 = arith.mulf %513, %513 : vector<8x128xf32>
    %516 = arith.subf %514, %515 : vector<8x128xf32>
    %517 = arith.mulf %508, %513 : vector<8x128xf32>
    %518 = arith.mulf %513, %508 : vector<8x128xf32>
    %519 = arith.addf %517, %518 : vector<8x128xf32>
    %520 = arith.mulf %516, %516 : vector<8x128xf32>
    %521 = arith.mulf %519, %519 : vector<8x128xf32>
    %522 = arith.addf %520, %521 : vector<8x128xf32>
    %cst_150 = arith.constant 1.000000e-30 : f32
    %523 = vector.broadcast %cst_150 : f32 to vector<8x128xf32>
    %524 = arith.maximumf %522, %523 : vector<8x128xf32>
    %525 = tpu.reciprocal %524 {approx = true} : vector<8x128xf32> -> vector<8x128xf32>
    %526 = arith.mulf %277, %516 : vector<8x128xf32>
    %527 = arith.mulf %278, %519 : vector<8x128xf32>
    %528 = arith.addf %526, %527 : vector<8x128xf32>
    %529 = arith.mulf %528, %525 : vector<8x128xf32>
    %530 = arith.mulf %278, %516 : vector<8x128xf32>
    %531 = arith.mulf %277, %519 : vector<8x128xf32>
    %532 = arith.subf %530, %531 : vector<8x128xf32>
    %533 = arith.mulf %532, %525 : vector<8x128xf32>
    %cst_151 = arith.constant 2.000000e+00 : f32
    %534 = vector.broadcast %cst_151 : f32 to vector<8x128xf32>
    %535 = arith.mulf %534, %508 : vector<8x128xf32>
    %536 = arith.addf %535, %529 : vector<8x128xf32>
    %cst_152 = arith.constant 0.333333343 : f32
    %537 = vector.broadcast %cst_152 : f32 to vector<8x128xf32>
    %538 = arith.mulf %536, %537 : vector<8x128xf32>
    %cst_153 = arith.constant 2.000000e+00 : f32
    %539 = vector.broadcast %cst_153 : f32 to vector<8x128xf32>
    %540 = arith.mulf %539, %513 : vector<8x128xf32>
    %541 = arith.addf %540, %533 : vector<8x128xf32>
    %cst_154 = arith.constant 0.333333343 : f32
    %542 = vector.broadcast %cst_154 : f32 to vector<8x128xf32>
    %543 = arith.mulf %541, %542 : vector<8x128xf32>
    %544 = arith.mulf %538, %538 : vector<8x128xf32>
    %545 = arith.mulf %543, %543 : vector<8x128xf32>
    %546 = arith.subf %544, %545 : vector<8x128xf32>
    %547 = arith.mulf %538, %543 : vector<8x128xf32>
    %548 = arith.mulf %543, %538 : vector<8x128xf32>
    %549 = arith.addf %547, %548 : vector<8x128xf32>
    %550 = arith.mulf %546, %546 : vector<8x128xf32>
    %551 = arith.mulf %549, %549 : vector<8x128xf32>
    %552 = arith.addf %550, %551 : vector<8x128xf32>
    %cst_155 = arith.constant 1.000000e-30 : f32
    %553 = vector.broadcast %cst_155 : f32 to vector<8x128xf32>
    %554 = arith.maximumf %552, %553 : vector<8x128xf32>
    %555 = tpu.reciprocal %554 {approx = true} : vector<8x128xf32> -> vector<8x128xf32>
    %556 = arith.mulf %277, %546 : vector<8x128xf32>
    %557 = arith.mulf %278, %549 : vector<8x128xf32>
    %558 = arith.addf %556, %557 : vector<8x128xf32>
    %559 = arith.mulf %558, %555 : vector<8x128xf32>
    %560 = arith.mulf %278, %546 : vector<8x128xf32>
    %561 = arith.mulf %277, %549 : vector<8x128xf32>
    %562 = arith.subf %560, %561 : vector<8x128xf32>
    %563 = arith.mulf %562, %555 : vector<8x128xf32>
    %cst_156 = arith.constant 2.000000e+00 : f32
    %564 = vector.broadcast %cst_156 : f32 to vector<8x128xf32>
    %565 = arith.mulf %564, %538 : vector<8x128xf32>
    %566 = arith.addf %565, %559 : vector<8x128xf32>
    %cst_157 = arith.constant 0.333333343 : f32
    %567 = vector.broadcast %cst_157 : f32 to vector<8x128xf32>
    %568 = arith.mulf %566, %567 : vector<8x128xf32>
    %cst_158 = arith.constant 2.000000e+00 : f32
    %569 = vector.broadcast %cst_158 : f32 to vector<8x128xf32>
    %570 = arith.mulf %569, %543 : vector<8x128xf32>
    %571 = arith.addf %570, %563 : vector<8x128xf32>
    %cst_159 = arith.constant 0.333333343 : f32
    %572 = vector.broadcast %cst_159 : f32 to vector<8x128xf32>
    %573 = arith.mulf %571, %572 : vector<8x128xf32>
    %574 = arith.mulf %568, %568 : vector<8x128xf32>
    %575 = arith.mulf %573, %573 : vector<8x128xf32>
    %576 = arith.subf %574, %575 : vector<8x128xf32>
    %577 = arith.mulf %568, %573 : vector<8x128xf32>
    %578 = arith.mulf %573, %568 : vector<8x128xf32>
    %579 = arith.addf %577, %578 : vector<8x128xf32>
    %580 = arith.mulf %576, %576 : vector<8x128xf32>
    %581 = arith.mulf %579, %579 : vector<8x128xf32>
    %582 = arith.addf %580, %581 : vector<8x128xf32>
    %cst_160 = arith.constant 1.000000e-30 : f32
    %583 = vector.broadcast %cst_160 : f32 to vector<8x128xf32>
    %584 = arith.maximumf %582, %583 : vector<8x128xf32>
    %585 = tpu.reciprocal %584 {approx = true} : vector<8x128xf32> -> vector<8x128xf32>
    %586 = arith.mulf %277, %576 : vector<8x128xf32>
    %587 = arith.mulf %278, %579 : vector<8x128xf32>
    %588 = arith.addf %586, %587 : vector<8x128xf32>
    %589 = arith.mulf %588, %585 : vector<8x128xf32>
    %590 = arith.mulf %278, %576 : vector<8x128xf32>
    %591 = arith.mulf %277, %579 : vector<8x128xf32>
    %592 = arith.subf %590, %591 : vector<8x128xf32>
    %593 = arith.mulf %592, %585 : vector<8x128xf32>
    %cst_161 = arith.constant 2.000000e+00 : f32
    %594 = vector.broadcast %cst_161 : f32 to vector<8x128xf32>
    %595 = arith.mulf %594, %568 : vector<8x128xf32>
    %596 = arith.addf %595, %589 : vector<8x128xf32>
    %cst_162 = arith.constant 0.333333343 : f32
    %597 = vector.broadcast %cst_162 : f32 to vector<8x128xf32>
    %598 = arith.mulf %596, %597 : vector<8x128xf32>
    %cst_163 = arith.constant 2.000000e+00 : f32
    %599 = vector.broadcast %cst_163 : f32 to vector<8x128xf32>
    %600 = arith.mulf %599, %573 : vector<8x128xf32>
    %601 = arith.addf %600, %593 : vector<8x128xf32>
    %cst_164 = arith.constant 0.333333343 : f32
    %602 = vector.broadcast %cst_164 : f32 to vector<8x128xf32>
    %603 = arith.mulf %601, %602 : vector<8x128xf32>
    %cst_165 = arith.constant 0.000000e+00 : f32
    %604 = vector.broadcast %cst_165 : f32 to vector<8x128xf32>
    %605 = arith.select %284, %598, %604 : vector<8x128xi1>, vector<8x128xf32>
    %cst_166 = arith.constant 0.000000e+00 : f32
    %606 = vector.broadcast %cst_166 : f32 to vector<8x128xf32>
    %607 = arith.select %284, %603, %606 : vector<8x128xi1>, vector<8x128xf32>
    %cst_167 = arith.constant 0.000000e+00 : f32
    %608 = vector.broadcast %cst_167 : f32 to vector<8x128xf32>
    %609 = arith.subf %608, %219 : vector<8x128xf32>
    %cst_168 = arith.constant 0.000000e+00 : f32
    %610 = vector.broadcast %cst_168 : f32 to vector<8x128xf32>
    %611 = arith.subf %610, %221 : vector<8x128xf32>
    %612 = arith.mulf %605, %605 : vector<8x128xf32>
    %613 = arith.mulf %607, %607 : vector<8x128xf32>
    %614 = arith.addf %612, %613 : vector<8x128xf32>
    %cst_169 = arith.constant 1.000000e-30 : f32
    %615 = vector.broadcast %cst_169 : f32 to vector<8x128xf32>
    %616 = arith.maximumf %614, %615 : vector<8x128xf32>
    %cst_170 = arith.constant 1.000000e+00 : f32
    %617 = vector.broadcast %cst_170 : f32 to vector<8x128xf32>
    %618 = arith.divf %617, %616 : vector<8x128xf32>
    %619 = arith.mulf %609, %605 : vector<8x128xf32>
    %620 = arith.mulf %611, %607 : vector<8x128xf32>
    %621 = arith.addf %619, %620 : vector<8x128xf32>
    %622 = arith.mulf %621, %618 : vector<8x128xf32>
    %623 = arith.mulf %611, %605 : vector<8x128xf32>
    %624 = arith.mulf %609, %607 : vector<8x128xf32>
    %625 = arith.subf %623, %624 : vector<8x128xf32>
    %626 = arith.mulf %625, %618 : vector<8x128xf32>
    %627 = arith.mulf %605, %605 : vector<8x128xf32>
    %628 = arith.mulf %607, %607 : vector<8x128xf32>
    %629 = arith.addf %627, %628 : vector<8x128xf32>
    %cst_171 = arith.constant 9.99999968E-21 : f32
    %630 = vector.broadcast %cst_171 : f32 to vector<8x128xf32>
    %631 = arith.cmpf olt, %629, %630 : vector<8x128xf32>
    %cst_172 = arith.constant 0.000000e+00 : f32
    %632 = vector.broadcast %cst_172 : f32 to vector<8x128xf32>
    %633 = arith.select %631, %632, %605 : vector<8x128xi1>, vector<8x128xf32>
    %cst_173 = arith.constant 0.000000e+00 : f32
    %634 = vector.broadcast %cst_173 : f32 to vector<8x128xf32>
    %635 = arith.select %631, %634, %607 : vector<8x128xi1>, vector<8x128xf32>
    %cst_174 = arith.constant 0.000000e+00 : f32
    %636 = vector.broadcast %cst_174 : f32 to vector<8x128xf32>
    %637 = arith.select %631, %636, %622 : vector<8x128xi1>, vector<8x128xf32>
    %cst_175 = arith.constant 0.000000e+00 : f32
    %638 = vector.broadcast %cst_175 : f32 to vector<8x128xf32>
    %639 = arith.select %631, %638, %626 : vector<8x128xi1>, vector<8x128xf32>
    %cst_176 = arith.constant 0.000000e+00 : f32
    %640 = vector.broadcast %cst_176 : f32 to vector<8x128xf32>
    %641 = arith.subf %640, %161 : vector<8x128xf32>
    %cst_177 = arith.constant 3.000000e+00 : f32
    %642 = vector.broadcast %cst_177 : f32 to vector<8x128xf32>
    %643 = arith.divf %641, %642 : vector<8x128xf32>
    %cst_178 = arith.constant 0.000000e+00 : f32
    %644 = vector.broadcast %cst_178 : f32 to vector<8x128xf32>
    %645 = arith.subf %644, %163 : vector<8x128xf32>
    %cst_179 = arith.constant 3.000000e+00 : f32
    %646 = vector.broadcast %cst_179 : f32 to vector<8x128xf32>
    %647 = arith.divf %645, %646 : vector<8x128xf32>
    %648 = arith.addf %633, %637 : vector<8x128xf32>
    %649 = arith.addf %648, %643 : vector<8x128xf32>
    %650 = arith.addf %635, %639 : vector<8x128xf32>
    %651 = arith.addf %650, %647 : vector<8x128xf32>
    %cst_180 = arith.constant -5.000000e-01 : f32
    %652 = vector.broadcast %cst_180 : f32 to vector<8x128xf32>
    %653 = arith.mulf %633, %652 : vector<8x128xf32>
    %cst_181 = arith.constant 0.866025388 : f32
    %654 = vector.broadcast %cst_181 : f32 to vector<8x128xf32>
    %655 = arith.mulf %635, %654 : vector<8x128xf32>
    %656 = arith.subf %653, %655 : vector<8x128xf32>
    %cst_182 = arith.constant 0.866025388 : f32
    %657 = vector.broadcast %cst_182 : f32 to vector<8x128xf32>
    %658 = arith.mulf %633, %657 : vector<8x128xf32>
    %cst_183 = arith.constant -5.000000e-01 : f32
    %659 = vector.broadcast %cst_183 : f32 to vector<8x128xf32>
    %660 = arith.mulf %635, %659 : vector<8x128xf32>
    %661 = arith.addf %658, %660 : vector<8x128xf32>
    %cst_184 = arith.constant -5.000000e-01 : f32
    %662 = vector.broadcast %cst_184 : f32 to vector<8x128xf32>
    %663 = arith.mulf %637, %662 : vector<8x128xf32>
    %cst_185 = arith.constant -0.866025388 : f32
    %664 = vector.broadcast %cst_185 : f32 to vector<8x128xf32>
    %665 = arith.mulf %639, %664 : vector<8x128xf32>
    %666 = arith.subf %663, %665 : vector<8x128xf32>
    %cst_186 = arith.constant -0.866025388 : f32
    %667 = vector.broadcast %cst_186 : f32 to vector<8x128xf32>
    %668 = arith.mulf %637, %667 : vector<8x128xf32>
    %cst_187 = arith.constant -5.000000e-01 : f32
    %669 = vector.broadcast %cst_187 : f32 to vector<8x128xf32>
    %670 = arith.mulf %639, %669 : vector<8x128xf32>
    %671 = arith.addf %668, %670 : vector<8x128xf32>
    %672 = arith.addf %656, %666 : vector<8x128xf32>
    %673 = arith.addf %672, %643 : vector<8x128xf32>
    %674 = arith.addf %661, %671 : vector<8x128xf32>
    %675 = arith.addf %674, %647 : vector<8x128xf32>
    %cst_188 = arith.constant -5.000000e-01 : f32
    %676 = vector.broadcast %cst_188 : f32 to vector<8x128xf32>
    %677 = arith.mulf %633, %676 : vector<8x128xf32>
    %cst_189 = arith.constant -0.866025388 : f32
    %678 = vector.broadcast %cst_189 : f32 to vector<8x128xf32>
    %679 = arith.mulf %635, %678 : vector<8x128xf32>
    %680 = arith.subf %677, %679 : vector<8x128xf32>
    %cst_190 = arith.constant -0.866025388 : f32
    %681 = vector.broadcast %cst_190 : f32 to vector<8x128xf32>
    %682 = arith.mulf %633, %681 : vector<8x128xf32>
    %cst_191 = arith.constant -5.000000e-01 : f32
    %683 = vector.broadcast %cst_191 : f32 to vector<8x128xf32>
    %684 = arith.mulf %635, %683 : vector<8x128xf32>
    %685 = arith.addf %682, %684 : vector<8x128xf32>
    %cst_192 = arith.constant -5.000000e-01 : f32
    %686 = vector.broadcast %cst_192 : f32 to vector<8x128xf32>
    %687 = arith.mulf %637, %686 : vector<8x128xf32>
    %cst_193 = arith.constant 0.866025388 : f32
    %688 = vector.broadcast %cst_193 : f32 to vector<8x128xf32>
    %689 = arith.mulf %639, %688 : vector<8x128xf32>
    %690 = arith.subf %687, %689 : vector<8x128xf32>
    %cst_194 = arith.constant 0.866025388 : f32
    %691 = vector.broadcast %cst_194 : f32 to vector<8x128xf32>
    %692 = arith.mulf %637, %691 : vector<8x128xf32>
    %cst_195 = arith.constant -5.000000e-01 : f32
    %693 = vector.broadcast %cst_195 : f32 to vector<8x128xf32>
    %694 = arith.mulf %639, %693 : vector<8x128xf32>
    %695 = arith.addf %692, %694 : vector<8x128xf32>
    %696 = arith.addf %680, %690 : vector<8x128xf32>
    %697 = arith.addf %696, %643 : vector<8x128xf32>
    %698 = arith.addf %685, %695 : vector<8x128xf32>
    %699 = arith.addf %698, %647 : vector<8x128xf32>
    %c0_196 = arith.constant 0 : index
    %c0_197 = arith.constant 0 : index
    %c0_198 = arith.constant 0 : index
    %700 = vector.load %arg2[%c0_196, %c0_197, %c0_198] : memref<6x8x128xf32, #tpu.memory_space<vmem>>, vector<1x8x128xf32>
    %701 = vector.shape_cast %700 : vector<1x8x128xf32> to vector<8x128xf32>
    %702 = vector.shape_cast %649 : vector<8x128xf32> to vector<1x8x128xf32>
    tpu.vector_store %arg2[%c0_196, %c0_197, %c0_198], %702 {strides = array<i32>} : memref<6x8x128xf32, #tpu.memory_space<vmem>>, vector<1x8x128xf32>,
    %c1_199 = arith.constant 1 : index
    %c0_200 = arith.constant 0 : index
    %c0_201 = arith.constant 0 : index
    %703 = vector.load %arg2[%c1_199, %c0_200, %c0_201] : memref<6x8x128xf32, #tpu.memory_space<vmem>>, vector<1x8x128xf32>
    %704 = vector.shape_cast %703 : vector<1x8x128xf32> to vector<8x128xf32>
    %705 = vector.shape_cast %673 : vector<8x128xf32> to vector<1x8x128xf32>
    tpu.vector_store %arg2[%c1_199, %c0_200, %c0_201], %705 {strides = array<i32>} : memref<6x8x128xf32, #tpu.memory_space<vmem>>, vector<1x8x128xf32>,
    %c2_202 = arith.constant 2 : index
    %c0_203 = arith.constant 0 : index
    %c0_204 = arith.constant 0 : index
    %706 = vector.load %arg2[%c2_202, %c0_203, %c0_204] : memref<6x8x128xf32, #tpu.memory_space<vmem>>, vector<1x8x128xf32>
    %707 = vector.shape_cast %706 : vector<1x8x128xf32> to vector<8x128xf32>
    %708 = vector.shape_cast %697 : vector<8x128xf32> to vector<1x8x128xf32>
    tpu.vector_store %arg2[%c2_202, %c0_203, %c0_204], %708 {strides = array<i32>} : memref<6x8x128xf32, #tpu.memory_space<vmem>>, vector<1x8x128xf32>,
    %c3_205 = arith.constant 3 : index
    %c0_206 = arith.constant 0 : index
    %c0_207 = arith.constant 0 : index
    %709 = vector.load %arg2[%c3_205, %c0_206, %c0_207] : memref<6x8x128xf32, #tpu.memory_space<vmem>>, vector<1x8x128xf32>
    %710 = vector.shape_cast %709 : vector<1x8x128xf32> to vector<8x128xf32>
    %711 = vector.shape_cast %651 : vector<8x128xf32> to vector<1x8x128xf32>
    tpu.vector_store %arg2[%c3_205, %c0_206, %c0_207], %711 {strides = array<i32>} : memref<6x8x128xf32, #tpu.memory_space<vmem>>, vector<1x8x128xf32>,
    %c4_208 = arith.constant 4 : index
    %c0_209 = arith.constant 0 : index
    %c0_210 = arith.constant 0 : index
    %712 = vector.load %arg2[%c4_208, %c0_209, %c0_210] : memref<6x8x128xf32, #tpu.memory_space<vmem>>, vector<1x8x128xf32>
    %713 = vector.shape_cast %712 : vector<1x8x128xf32> to vector<8x128xf32>
    %714 = vector.shape_cast %675 : vector<8x128xf32> to vector<1x8x128xf32>
    tpu.vector_store %arg2[%c4_208, %c0_209, %c0_210], %714 {strides = array<i32>} : memref<6x8x128xf32, #tpu.memory_space<vmem>>, vector<1x8x128xf32>,
    %c5_211 = arith.constant 5 : index
    %c0_212 = arith.constant 0 : index
    %c0_213 = arith.constant 0 : index
    %715 = vector.load %arg2[%c5_211, %c0_212, %c0_213] : memref<6x8x128xf32, #tpu.memory_space<vmem>>, vector<1x8x128xf32>
    %716 = vector.shape_cast %715 : vector<1x8x128xf32> to vector<8x128xf32>
    %717 = vector.shape_cast %699 : vector<8x128xf32> to vector<1x8x128xf32>
    tpu.vector_store %arg2[%c5_211, %c0_212, %c0_213], %717 {strides = array<i32>} : memref<6x8x128xf32, #tpu.memory_space<vmem>>, vector<1x8x128xf32>,
    return
  }
  func.func @transform_0(%arg0: i32) -> (i32, i32, i32) {
    %c0_i32 = arith.constant 0 : i32
    %c0_i32_0 = arith.constant 0 : i32
    %c0_i32_1 = arith.constant 0 : i32
    return %c0_i32, %arg0, %c0_i32_0 : i32, i32, i32
  }
  func.func @transform_1(%arg0: i32) -> (i32, i32, i32) {
    %c0_i32 = arith.constant 0 : i32
    %c0_i32_0 = arith.constant 0 : i32
    %c0_i32_1 = arith.constant 0 : i32
    return %c0_i32, %arg0, %c0_i32_0 : i32, i32, i32
  }
}

</mosaic_0001>

<bundles_post_ra>
// kernel: tpu_custom_call.1
= control target key start
LH: loop header
LB: loop body
LE: loop exit
PB: predicated region body
PF: predicated region fallthrough
CT: control target
= control target key end

     0   :  { %6 = vsyncpa [#allocation3], 0  ;;  %s1009_s0 = inlined_call_operand.hbm [shape: f32[18,8,128], index: 0, kind: input, shape index: {}]   ;;  %s1010_s1 = inlined_call_operand.hbm [shape: f32[6,8,128], index: 1, kind: output, shape index: {}]  }
   0x1   :  { %7 = vsyncpa [#allocation4], 0  ;;  %s801_s6 = smov [#allocation2]   ;;  %s753_s10 = scalar_lea.hbm %s1009_s0, 2304 }
   0x2   :  { %s13_s7 = sshll.u32 %s801_s6, 4  ;;  %p754_p0 = scmp.ne.s32.totalorder %s1009_s0, %s753_s10  ;;  %s14_s7 = int_to_ptr.vmem [resolvable:$true] %s13_s7 }
   0x3   :  { %p757_p1 = scmp.lt.u32.totalorder %s753_s10, %s1009_s0 }
   0x5   :  { %p759_p2 = pnand %p757_p1, %p754_p0 }
   0x7   :  { %762 = shalt.err (!%p759_p2)
}
   0x8   :  { %s763_s15 = scalar_lea.vmem %s14_s7, 2304  ;;  %p768_p4 = scmp.lt.s32.totalorder %s14_s7, %s14_s7 }
   0x9   :  { %p764_p3 = scmp.ne.s32.totalorder %s14_s7, %s763_s15  ;;  %p769_p5 = scmp.lt.s32.totalorder %s763_s15, %s763_s15 }
   0xb   :  { %p770_p6 = por %p769_p5, %p768_p4 }
   0xd   :  { %p771_p7 = pnand %p770_p6, %p764_p3 }
   0xf   :  { %774 = shalt.err (!%p771_p7)
}
  0x10   :  { %s802_s16 = smov 128   ;;  %s803_s17 = smov 8  }
  0x11   :  { %19 = dma.hbm_to_vmem [thread:$0]  %s1009_s0, 2304, %s14_s7, [#allocation3], %s802_s16, %s802_s16, %s803_s17  }
  0x12   :  { %797 = dma.done.wait [#allocation3], 2304  }
  0x13   :  { %798 = vsyncadd [#allocation3], 4294964992  ;;  %v831_v0 = vld [vmem:[#allocation2 + $0x20] sm:$0xff]  ;;  %v833_v1 = vld [vmem:[#allocation2 + $0x68] sm:$0xff]  ;;  %s805_s0 = smov [#allocation5]  }
  0x14   :  { %v835_v2 = vld [vmem:[#allocation2 + $0x40] sm:$0xff]  ;;  %v837_v3 = vld [vmem:[#allocation2 + $0x88] sm:$0xff]  ;;  %v34_v5 = vld [vmem:[#allocation2 + $0x70] sm:$0xff]  ;;  %v845_v8 = vmul.f32 %v831_v0, %v831_v0  ;;  %v849_v9 = vmul.f32 %v833_v1, %v833_v1  ;;  %v56_v14 = vmul.f32 %v833_v1, %v831_v0  ;;  %s680_s20 = sshll.u32 %s805_s0, 4  ;;  %s681_s20 = int_to_ptr.vmem [resolvable:$true] %s680_s20 }
  0x15   :  { %v32_v4 = vld [vmem:[#allocation2 + $0x28] sm:$0xff]  ;;  %v39_v6 = vmul.f32 %v835_v2, %v831_v0  ;;  %v43_v7 = vmul.f32 %v835_v2, %v833_v1  ;;  %v36_v10 = vld [vmem:[#allocation2 + $0x38] sm:$0xff]  ;;  %v38_v11 = vld [vmem:[#allocation2 + $0x80] sm:$0xff]  ;;  %v40_v12 = vmul.f32 %v837_v3, %v833_v1  ;;  %v42_v13 = vmul.f32 %v837_v3, %v831_v0  ;;  %s775_s21 = scalar_lea.vmem %s681_s20, 768  ;;  %p780_p9 = scmp.lt.s32.totalorder %s681_s20, %s681_s20 }
  0x16   :  { %v859_v15 = vmul.f32 %v835_v2, %v835_v2  ;;  %v45_v16 = vmul.f32 %v36_v10, %v32_v4  ;;  %v46_v17 = vmul.f32 %v38_v11, %v34_v5  ;;  %v48_v18 = vmul.f32 %v38_v11, %v32_v4  ;;  %v64_v28 = vld [vmem:[#allocation2 + $0x18] sm:$0xff]  ;;  %v66_v29 = vld [vmem:[#allocation2 + $0x60] sm:$0xff]  ;;  %v68_v38 = vld [vmem:[#allocation2 + $0x30] sm:$0xff]  ;;  %p776_p8 = scmp.ne.s32.totalorder %s681_s20, %s775_s21  ;;  %p781_p10 = scmp.lt.s32.totalorder %s775_s21, %s775_s21 }
  0x17   :  { %v49_v19 = vmul.f32 %v36_v10, %v34_v5  ;;  %v41_v20 = vsub.f32 %v39_v6, %v40_v12  ;;  %v44_v21 = vadd.f32 %v43_v7, %v42_v13  ;;  %v55_v22 = vsub.f32 %v845_v8, %v849_v9  ;;  %v70_v39 = vld [vmem:[#allocation2 + $0x78] sm:$0xff]  ;;  %v99_v52 = vld [vmem:[#allocation2] sm:$0xff]  ;;  %v101_v57 = vld [vmem:[#allocation2 + $0x48] sm:$0xff] }
  0x18   :  { %v863_v23 = vadd.f32 %v56_v14, %v56_v14  ;;  %v865_v24 = vsub.f32 %v45_v16, %v46_v17  ;;  %v871_v26 = vmul.f32 %v837_v3, %v837_v3  ;;  %v61_v27 = vmul.f32 %v837_v3, %v835_v2  ;;  %v103_v61 = vld [vmem:[#allocation2 + $0x8] sm:$0xff]  ;;  %v105_v62 = vld [vmem:[#allocation2 + $0x50] sm:$0xff]  ;;  %v109_v12 = vld [vmem:[#allocation2 + $0x58] sm:$0xff]  ;;  %p782_p11 = por %p781_p10, %p780_p9 }
  0x19   :  { %v867_v25 = vadd.f32 %v49_v19, %v48_v18  ;;  %v71_v30 = vmul.f32 %v64_v28, %v835_v2  ;;  %v72_v31 = vmul.f32 %v66_v29, %v837_v3  ;;  %v74_v32 = vmul.f32 %v64_v28, %v837_v3 }
  0x1a   :  { %v75_v33 = vmul.f32 %v66_v29, %v835_v2  ;;  %v880_v34 = vsub.f32 %v41_v20, %v865_v24  ;;  %v60_v36 = vsub.f32 %v859_v15, %v871_v26  ;;  %v62_v37 = vadd.f32 %v61_v27, %v61_v27  ;;  %p783_p12 = pnand %p782_p11, %p776_p8 }
  0x1b   :  { %v883_v35 = vsub.f32 %v44_v21, %v867_v25  ;;  %v73_v40 = vsub.f32 %v71_v30, %v72_v31  ;;  %v77_v42 = vmul.f32 %v68_v38, %v32_v4  ;;  %v78_v43 = vmul.f32 %v70_v39, %v34_v5 }
  0x1c   :  { %v76_v41 = vadd.f32 %v75_v33, %v74_v32  ;;  %v80_v44 = vmul.f32 %v70_v39, %v32_v4  ;;  %v81_v45 = vmul.f32 %v68_v38, %v34_v5  ;;  %v85_v46 = vmul.f32 %v64_v28, %v36_v10 }
  0x1d   :  { %v86_v47 = vmul.f32 %v66_v29, %v38_v11  ;;  %v79_v48 = vsub.f32 %v77_v42, %v78_v43  ;;  %v88_v49 = vmul.f32 %v64_v28, %v38_v11  ;;  %v89_v50 = vmul.f32 %v66_v29, %v36_v10  ;;  %v107_v11 = vld [vmem:[#allocation2 + $0x10] sm:$0xff] }
  0x1e   :  { %v91_v51 = vmul.f32 %v68_v38, %v831_v0  ;;  %v82_v53 = vadd.f32 %v81_v45, %v80_v44  ;;  %v92_v55 = vmul.f32 %v70_v39, %v833_v1  ;;  %v94_v56 = vmul.f32 %v70_v39, %v831_v0 }
  0x1f   :  { %v87_v54 = vsub.f32 %v85_v46, %v86_v47  ;;  %v83_v58 = vsub.f32 %v73_v40, %v79_v48  ;;  %v90_v59 = vadd.f32 %v89_v50, %v88_v49  ;;  %v95_v60 = vmul.f32 %v68_v38, %v833_v1 }
  0x20   :  { %v110_v63 = vadd.f32 %v99_v52, %v831_v0  ;;  %v84_v4 = vsub.f32 %v76_v41, %v82_v53  ;;  %v93_v5 = vsub.f32 %v91_v51, %v92_v55  ;;  %v112_v6 = vadd.f32 %v101_v57, %v833_v1 }
  0x21   :  { %v114_v7 = vmul.f32 %v99_v52, %v99_v52  ;;  %v96_v10 = vadd.f32 %v95_v60, %v94_v56  ;;  %v115_v14 = vmul.f32 %v101_v57, %v101_v57  ;;  %v117_v15 = vmul.f32 %v101_v57, %v99_v52 }
  0x22   :  { %v111_v13 = vadd.f32 %v110_v63, %v835_v2  ;;  %v97_v16 = vsub.f32 %v87_v54, %v93_v5  ;;  %v113_v17 = vadd.f32 %v112_v6, %v837_v3  ;;  %v119_v18 = vmul.f32 %v103_v61, %v64_v28 }
  0x23   :  { %v120_v19 = vmul.f32 %v105_v62, %v66_v29  ;;  %v98_v20 = vsub.f32 %v90_v59, %v96_v10  ;;  %v116_v21 = vsub.f32 %v114_v7, %v115_v14  ;;  %v118_v0 = vadd.f32 %v117_v15, %v117_v15 }
  0x24   :  { %v122_v26 = vmul.f32 %v103_v61, %v66_v29  ;;  %v123_v30 = vmul.f32 %v105_v62, %v64_v28  ;;  %v125_v1 = vmul.f32 %v107_v11, %v68_v38  ;;  %v126_v31 = vmul.f32 %v109_v12, %v70_v39 }
  0x25   :  { %v121_v27 = vsub.f32 %v119_v18, %v120_v19  ;;  %v128_v32 = vmul.f32 %v107_v11, %v70_v39  ;;  %v129_v33 = vmul.f32 %v109_v12, %v68_v38  ;;  %v131_v2 = vadd.f32 %v116_v21, %v55_v22 }
  0x26   :  { %v137_v40 = vadd.f32 %v118_v0, %v863_v23  ;;  %v124_v41 = vadd.f32 %v123_v30, %v122_v26  ;;  %v127_v3 = vsub.f32 %v125_v1, %v126_v31  ;;  %v143_v42 = vmul.f32 %v111_v13, %v111_v13 }
  0x27   :  { %v144_v43 = vmul.f32 %v113_v17, %v113_v17  ;;  %v130_v44 = vadd.f32 %v129_v33, %v128_v32  ;;  %v132_v45 = vadd.f32 %v131_v2, %v60_v36  ;;  %v146_v29 = vmul.f32 %v113_v17, %v111_v13 }
  0x28   :  { %v138_v46 = vadd.f32 %v137_v40, %v62_v37  ;;  %v133_v47 = vadd.f32 %v127_v3, %v121_v27  ;;  %v152_v48 = vmul.f32 %v99_v52, %v880_v34  ;;  %v153_v38 = vmul.f32 %v101_v57, %v883_v35 }
  0x29   :  { %v145_v28 = vsub.f32 %v143_v42, %v144_v43  ;;  %v139_v39 = vadd.f32 %v130_v44, %v124_v41  ;;  %v147_v49 = vadd.f32 %v146_v29, %v146_v29  ;;  %v155_v8 = vmul.f32 %v99_v52, %v883_v35 }
  0x2a   :  { %v156_v9 = vmul.f32 %v101_v57, %v880_v34  ;;  %v134_v22 = vadd.f32 %v133_v47, %v865_v24  ;;  %v154_v23 = vsub.f32 %v152_v48, %v153_v38  ;;  %v158_v50 = vmul.f32 %v103_v61, %v83_v58 }
  0x2b   :  { %v159_v51 = vmul.f32 %v105_v62, %v84_v4  ;;  %v140_v36 = vadd.f32 %v139_v39, %v867_v25  ;;  %v161_v53 = vmul.f32 %v103_v61, %v84_v4  ;;  %v162_v54 = vmul.f32 %v105_v62, %v83_v58 }
  0x2c   :  { %v157_v37 = vadd.f32 %v156_v9, %v155_v8  ;;  %v135_v55 = vmul.f32 2.0, %v134_v22  ;;  %v164_v59 = vmul.f32 %v107_v11, %v97_v16  ;;  %v165_v60 = vmul.f32 %v109_v12, %v98_v20 }
  0x2d   :  { %v160_v56 = vsub.f32 %v158_v50, %v159_v51  ;;  %v141_v63 = vmul.f32 2.0, %v140_v36  ;;  %v163_v5 = vadd.f32 %v162_v54, %v161_v53  ;;  %v167_v6 = vmul.f32 %v107_v11, %v98_v20 }
  0x2e   :  { %v168_v35 = vmul.f32 %v109_v12, %v97_v16  ;;  %v136_v52 = vadd.f32 %v135_v55, %v132_v45  ;;  %v905_v34 = vsub.f32 0.0, %v111_v13  ;;  %v166_v57 = vsub.f32 %v164_v59, %v165_v60 }
  0x2f   :  { %v142_v24 = vadd.f32 %v141_v63, %v138_v46  ;;  %v170_v7 = vsub.f32 %v154_v23, %v160_v56  ;;  %v907_v10 = vsub.f32 0.0, %v113_v17  ;;  %v172_v61 = vsub.f32 %v157_v37, %v163_v5 }
  0x30   :  { %v148_v25 = vsub.f32 %v145_v28, %v136_v52  ;;  %v169_v14 = vadd.f32 %v168_v35, %v167_v6  ;;  %v178_v58 = vmul.f32 %v905_v34, %v905_v34 }
  0x31   :  { %v150_v62 = vsub.f32 %v147_v49, %v142_v24  ;;  %v179_v4 = vmul.f32 %v907_v10, %v907_v10  ;;  %v181_v11 = vmul.f32 %v907_v10, %v905_v34  ;;  %v171_v18 = vadd.f32 %v170_v7, %v166_v57 }
  0x32   :  { %v149_v12 = vmul.f32 0.5, %v148_v25  ;;  %v173_v17 = vadd.f32 %v172_v61, %v169_v14 }
  0x33   :  { %v151_v13 = vmul.f32 0.5, %v150_v62  ;;  %v180_v15 = vsub.f32 %v178_v58, %v179_v4  ;;  %v182_v16 = vadd.f32 %v181_v11, %v181_v11  ;;  %v176_v43 = vsub.f32 0.0, %v171_v18 }
  0x34   :  { %v194_v19 = vmul.f32 %v905_v34, %v149_v12  ;;  %v198_v20 = vmul.f32 %v907_v10, %v149_v12  ;;  %v177_v44 = vsub.f32 0.0, %v173_v17 }
  0x35   :  { %v183_v21 = vmul.f32 %v180_v15, %v905_v34  ;;  %v184_v0 = vmul.f32 %v182_v16, %v907_v10  ;;  %v186_v26 = vmul.f32 %v180_v15, %v907_v10  ;;  %v187_v27 = vmul.f32 %v182_v16, %v905_v34 }
  0x36   :  { %v190_v30 = vmul.f32 0.33333334, %v180_v15  ;;  %v192_v1 = vmul.f32 0.33333334, %v182_v16  ;;  %v195_v31 = vmul.f32 %v907_v10, %v151_v13  ;;  %v197_v32 = vmul.f32 %v905_v34, %v151_v13 }
  0x37   :  { %v185_v33 = vsub.f32 %v183_v21, %v184_v0  ;;  %v188_v2 = vadd.f32 %v187_v27, %v186_v26 }
  0x38   :  { %v191_v40 = vsub.f32 %v149_v12, %v190_v30  ;;  %v193_v41 = vsub.f32 %v151_v13, %v192_v1  ;;  %v196_v3 = vsub.f32 %v194_v19, %v195_v31  ;;  %v199_v42 = vadd.f32 %v198_v20, %v197_v32 }
  0x39   :  { %v200_v45 = vmul.f32 2.0, %v185_v33  ;;  %v206_v46 = vmul.f32 2.0, %v188_v2  ;;  %v804_v33 = vmov -1.0  }
  0x3a   :  { %v203_v29 = vmul.f32 0.33333334, %v196_v3  ;;  %v208_v47 = vmul.f32 0.33333334, %v199_v42  ;;  %v923_v28 = vmul.f32 0.33333334, %v191_v40 }
  0x3b   :  { %v202_v48 = vmul.f32 0.037037037, %v200_v45  ;;  %v207_v38 = vmul.f32 0.037037037, %v206_v46  ;;  %v925_v39 = vmul.f32 0.33333334, %v193_v41 }
  0x3c   :  { %v220_v49 = vmul.f32 %v923_v28, %v923_v28 }
  0x3d   :  { %v204_v8 = vsub.f32 %v202_v48, %v203_v29  ;;  %v209_v9 = vsub.f32 %v207_v38, %v208_v47  ;;  %v221_v22 = vmul.f32 %v925_v39, %v925_v39  ;;  %v223_v23 = vmul.f32 %v925_v39, %v923_v28 }
  0x3f   :  { %v205_v50 = vadd.f32 %v204_v8, %v176_v43  ;;  %v210_v51 = vadd.f32 %v209_v9, %v177_v44  ;;  %v222_v36 = vsub.f32 %v220_v49, %v221_v22  ;;  %v224_v37 = vadd.f32 %v223_v23, %v223_v23 }
  0x41   :  { %v211_v53 = vmul.f32 0.5, %v205_v50  ;;  %v212_v54 = vmul.f32 0.5, %v210_v51  ;;  %v225_v55 = vmul.f32 %v222_v36, %v923_v28  ;;  %v226_v56 = vmul.f32 %v224_v37, %v925_v39 }
  0x42   :  { %v228_v59 = vmul.f32 %v222_v36, %v925_v39  ;;  %v229_v60 = vmul.f32 %v224_v37, %v923_v28 }
  0x43   :  { %v213_v63 = vmul.f32 %v211_v53, %v211_v53  ;;  %v214_v5 = vmul.f32 %v212_v54, %v212_v54  ;;  %v216_v6 = vmul.f32 %v212_v54, %v211_v53  ;;  %v227_v35 = vsub.f32 %v225_v55, %v226_v56 }
  0x44   :  { %v230_v52 = vadd.f32 %v229_v60, %v228_v59  ;;  %v266_v26 = vsub.f32 0.0, %v211_v53  ;;  %v268_v3 = vsub.f32 0.0, %v212_v54 }
  0x45   :  { %v215_v24 = vsub.f32 %v213_v63, %v214_v5  ;;  %v217_v57 = vadd.f32 %v216_v6, %v216_v6 }
  0x47   :  { %v231_v7 = vadd.f32 %v227_v35, %v215_v24  ;;  %v232_v25 = vadd.f32 %v230_v52, %v217_v57 }
  0x49   :  { %v233_v14 = vmul.f32 %v231_v7, %v231_v7  ;;  %v234_v61 = vmul.f32 %v232_v25, %v232_v25  ;;  %vm253_vm3 = vcmp.ge.f32.partialorder %v232_v25, 0.0 }
  0x4a   :  { %v254_v2 = vsel %vm253_vm3, 1.0, %v804_v33 }
  0x4b   :  { %v235_v58 = vadd.f32 %v234_v61, %v233_v14 }
  0x4d   :  { %697 = vrsqrt.f32 %v235_v58  ;;  %vm238_vm0 = vcmp.eq.f32.partialorder %v235_v58, inf  ;;  %v241_v4 = vand.u32 2147483648, %v235_v58  ;;  %vm240_vm1 = vcmp.eq.f32.partialorder %v235_v58, 0.0 }
  0x57   :  { %v698_v62 = vpop.eup %697 }
  0x58   :  { %v237_v11 = vmul.f32 %v698_v62, %v235_v58 }
  0x5a   :  { %v239_v12 = vsel %vm238_vm0, %v235_v58, %v237_v11 }
  0x5b   :  { %v242_v13 = vsel %vm240_vm1, %v241_v4, %v239_v12 }
  0x5c   :  { %v243_v15 = vadd.f32 %v242_v13, %v231_v7  ;;  %v255_v16 = vsub.f32 %v242_v13, %v231_v7 }
  0x5e   :  { %v244_v18 = vmul.f32 0.5, %v243_v15  ;;  %v256_v17 = vmul.f32 0.5, %v255_v16 }
  0x60   :  { %v245_v19 = vmax.f32 %v244_v18, 0.0  ;;  %v257_v20 = vmax.f32 %v256_v17, 0.0 }
  0x62   :  { %699 = vrsqrt.f32 %v245_v19  ;;  %vm248_vm2 = vcmp.eq.f32.partialorder %v245_v19, inf  ;;  %v251_v0 = vand.u32 2147483648, %v245_v19  ;;  %vm250_vm4 = vcmp.eq.f32.partialorder %v245_v19, 0.0 }
  0x63   :  { %701 = vrsqrt.f32 %v257_v20  ;;  %vm260_vm5 = vcmp.eq.f32.partialorder %v257_v20, inf  ;;  %v263_v1 = vand.u32 2147483648, %v257_v20  ;;  %vm262_vm6 = vcmp.eq.f32.partialorder %v257_v20, 0.0 }
  0x6c   :  { %v700_v21 = vpop.eup %699 }
  0x6d   :  { %v702_v27 = vpop.eup %701  ;;  %v247_v30 = vmul.f32 %v700_v21, %v245_v19 }
  0x6e   :  { %v259_v31 = vmul.f32 %v702_v27, %v257_v20 }
  0x6f   :  { %v249_v32 = vsel %vm248_vm2, %v245_v19, %v247_v30 }
  0x70   :  { %v252_v40 = vsel %vm250_vm4, %v251_v0, %v249_v32  ;;  %v261_v41 = vsel %vm260_vm5, %v257_v20, %v259_v31 }
  0x71   :  { %v264_v42 = vsel %vm262_vm6, %v263_v1, %v261_v41  ;;  %v267_v43 = vadd.f32 %v266_v26, %v252_v40  ;;  %v270_v44 = vsub.f32 %v266_v26, %v252_v40 }
  0x72   :  { %v265_v45 = vmul.f32 %v264_v42, %v254_v2 }
  0x73   :  { %v272_v47 = vmul.f32 %v267_v43, %v267_v43  ;;  %v275_v48 = vmul.f32 %v270_v44, %v270_v44 }
  0x74   :  { %v269_v46 = vadd.f32 %v268_v3, %v265_v45  ;;  %v271_v29 = vsub.f32 %v268_v3, %v265_v45 }
  0x76   :  { %v273_v38 = vmul.f32 %v269_v46, %v269_v46  ;;  %v276_v49 = vmul.f32 %v271_v29, %v271_v29 }
  0x78   :  { %v274_v8 = vadd.f32 %v273_v38, %v272_v47  ;;  %v277_v9 = vadd.f32 %v276_v49, %v275_v48 }
  0x7a   :  { %vm278_vm7 = vcmp.ge.f32.partialorder %v274_v8, %v277_v9 }
  0x7b   :  { %v938_v22 = vsel %vm278_vm7, %v267_v43, %v270_v44  ;;  %v940_v23 = vsel %vm278_vm7, %v269_v46, %v271_v29 }
  0x7c   :  { %v281_v50 = vmul.f32 %v938_v22, %v938_v22  ;;  %v282_v51 = vmul.f32 %v940_v23, %v940_v23 }
  0x7e   :  { %v283_v36 = vadd.f32 %v282_v51, %v281_v50 }
  0x80   :  { %703 = vrsqrt.f32 %v283_v36  ;;  %vm286_vm8 = vcmp.eq.f32.partialorder %v283_v36, inf  ;;  %v289_v53 = vand.u32 2147483648, %v283_v36  ;;  %vm288_vm9 = vcmp.eq.f32.partialorder %v283_v36, 0.0 }
  0x8a   :  { %v704_v37 = vpop.eup %703 }
  0x8b   :  { %v285_v54 = vmul.f32 %v704_v37, %v283_v36 }
  0x8d   :  { %v287_v55 = vsel %vm286_vm8, %v283_v36, %v285_v54 }
  0x8e   :  { %v946_v56 = vsel %vm288_vm9, %v289_v53, %v287_v55 }
  0x8f   :  { %vm291_vm10 = vcmp.gt.f32.partialorder %v946_v56, 1e-24 }
  0x90   :  { %v952_v59 = vsel %vm291_vm10, %v946_v56, 1.0 }
  0x91   :  { %705 = vrcp.f32 %v952_v59 }
  0x9b   :  { %v706_v60 = vpop.eup %705 }
  0x9c   :  { %v294_v63 = vmul.f32 %v706_v60, %v938_v22  ;;  %v295_v7 = vmul.f32 %v706_v60, %v940_v23 }
  0x9e   :  { %v296_v5 = vadd.f32 1.0, %v294_v63  ;;  %v308_v6 = vsub.f32 1.0, %v294_v63  ;;  %vm306_vm12 = vcmp.ge.f32.partialorder %v295_v7, 0.0 }
  0x9f   :  { %v307_v12 = vsel %vm306_vm12, 1.0, %v804_v33 }
  0xa0   :  { %v297_v35 = vmul.f32 0.5, %v296_v5  ;;  %v309_v52 = vmul.f32 0.5, %v308_v6 }
  0xa2   :  { %v298_v24 = vmax.f32 %v297_v35, 0.0  ;;  %v310_v57 = vmax.f32 %v309_v52, 0.0 }
  0xa4   :  { %707 = vrsqrt.f32 %v298_v24  ;;  %vm301_vm11 = vcmp.eq.f32.partialorder %v298_v24, inf  ;;  %v304_v14 = vand.u32 2147483648, %v298_v24  ;;  %vm303_vm13 = vcmp.eq.f32.partialorder %v298_v24, 0.0 }
  0xa5   :  { %709 = vrsqrt.f32 %v310_v57  ;;  %vm313_vm14 = vcmp.eq.f32.partialorder %v310_v57, inf  ;;  %v316_v62 = vand.u32 2147483648, %v310_v57  ;;  %vm315_vm15 = vcmp.eq.f32.partialorder %v310_v57, 0.0 }
  0xae   :  { %v708_v25 = vpop.eup %707 }
  0xaf   :  { %v710_v61 = vpop.eup %709  ;;  %v300_v58 = vmul.f32 %v708_v25, %v298_v24 }
  0xb0   :  { %v312_v4 = vmul.f32 %v710_v61, %v310_v57 }
  0xb1   :  { %v302_v11 = vsel %vm301_vm11, %v298_v24, %v300_v58 }
  0xb2   :  { %v305_v13 = vsel %vm303_vm13, %v304_v14, %v302_v11  ;;  %v314_v15 = vsel %vm313_vm14, %v310_v57, %v312_v4 }
  0xb3   :  { %v317_v16 = vsel %vm315_vm15, %v316_v62, %v314_v15  ;;  %v319_v18 = vadd.f32 1.0, %v305_v13  ;;  %v331_v17 = vsub.f32 1.0, %v305_v13 }
  0xb4   :  { %v318_v19 = vmul.f32 %v317_v16, %v307_v12 }
  0xb5   :  { %v320_v20 = vmul.f32 0.5, %v319_v18  ;;  %v332_v21 = vmul.f32 0.5, %v331_v17 }
  0xb6   :  { %vm329_vm1 = vcmp.ge.f32.partialorder %v318_v19, 0.0 }
  0xb7   :  { %v321_v0 = vmax.f32 %v320_v20, 0.0  ;;  %v333_v26 = vmax.f32 %v332_v21, 0.0  ;;  %v330_v41 = vsel %vm329_vm1, 1.0, %v804_v33 }
  0xb9   :  { %711 = vrsqrt.f32 %v321_v0  ;;  %vm324_vm0 = vcmp.eq.f32.partialorder %v321_v0, inf  ;;  %v327_v30 = vand.u32 2147483648, %v321_v0  ;;  %vm326_vm2 = vcmp.eq.f32.partialorder %v321_v0, 0.0 }
  0xba   :  { %713 = vrsqrt.f32 %v333_v26  ;;  %vm336_vm3 = vcmp.eq.f32.partialorder %v333_v26, inf  ;;  %v339_v32 = vand.u32 2147483648, %v333_v26  ;;  %vm338_vm4 = vcmp.eq.f32.partialorder %v333_v26, 0.0 }
  0xc3   :  { %v712_v27 = vpop.eup %711 }
  0xc4   :  { %v714_v1 = vpop.eup %713  ;;  %v323_v31 = vmul.f32 %v712_v27, %v321_v0 }
  0xc5   :  { %v335_v2 = vmul.f32 %v714_v1, %v333_v26 }
  0xc6   :  { %v325_v40 = vsel %vm324_vm0, %v321_v0, %v323_v31 }
  0xc7   :  { %v328_v3 = vsel %vm326_vm2, %v327_v30, %v325_v40  ;;  %v337_v42 = vsel %vm336_vm3, %v333_v26, %v335_v2 }
  0xc8   :  { %v340_v43 = vsel %vm338_vm4, %v339_v32, %v337_v42  ;;  %v344_v44 = vmul.f32 0.0, %v328_v3  ;;  %v346_v45 = vadd.f32 1.0, %v328_v3  ;;  %v358_v46 = vsub.f32 1.0, %v328_v3 }
  0xc9   :  { %v341_v29 = vmul.f32 %v340_v43, %v330_v41 }
  0xca   :  { %v347_v47 = vmul.f32 0.5, %v346_v45  ;;  %v359_v48 = vmul.f32 0.5, %v358_v46 }
  0xcb   :  { %v342_v38 = vmul.f32 0.0, %v341_v29  ;;  %v345_v49 = vadd.f32 %v344_v44, %v341_v29  ;;  %vm356_vm6 = vcmp.ge.f32.partialorder %v341_v29, 0.0 }
  0xcc   :  { %v348_v8 = vmax.f32 %v347_v47, 0.0  ;;  %v360_v9 = vmax.f32 %v359_v48, 0.0  ;;  %v357_v63 = vsel %vm356_vm6, 1.0, %v804_v33 }
  0xcd   :  { %v343_v50 = vsub.f32 %v328_v3, %v342_v38 }
  0xce   :  { %715 = vrsqrt.f32 %v348_v8  ;;  %vm351_vm5 = vcmp.eq.f32.partialorder %v348_v8, inf  ;;  %v354_v36 = vand.u32 2147483648, %v348_v8  ;;  %vm353_vm7 = vcmp.eq.f32.partialorder %v348_v8, 0.0 }
  0xcf   :  { %717 = vrsqrt.f32 %v360_v9  ;;  %vm363_vm8 = vcmp.eq.f32.partialorder %v360_v9, inf  ;;  %v366_v54 = vand.u32 2147483648, %v360_v9  ;;  %vm365_vm9 = vcmp.eq.f32.partialorder %v360_v9, 0.0 }
  0xd8   :  { %v716_v51 = vpop.eup %715 }
  0xd9   :  { %v718_v37 = vpop.eup %717  ;;  %v350_v53 = vmul.f32 %v716_v51, %v348_v8 }
  0xda   :  { %v362_v55 = vmul.f32 %v718_v37, %v360_v9 }
  0xdb   :  { %v352_v60 = vsel %vm351_vm5, %v348_v8, %v350_v53 }
  0xdc   :  { %v355_v5 = vsel %vm353_vm7, %v354_v36, %v352_v60  ;;  %v364_v6 = vsel %vm363_vm8, %v360_v9, %v362_v55 }
  0xdd   :  { %v367_v35 = vsel %vm365_vm9, %v366_v54, %v364_v6  ;;  %v369_v52 = vadd.f32 1.0, %v355_v5  ;;  %v381_v24 = vsub.f32 1.0, %v355_v5 }
  0xde   :  { %v368_v57 = vmul.f32 %v367_v35, %v357_v63 }
  0xdf   :  { %v370_v7 = vmul.f32 0.5, %v369_v52  ;;  %v382_v25 = vmul.f32 0.5, %v381_v24 }
  0xe0   :  { %vm379_vm12 = vcmp.ge.f32.partialorder %v368_v57, 0.0 }
  0xe1   :  { %v371_v14 = vmax.f32 %v370_v7, 0.0  ;;  %v383_v61 = vmax.f32 %v382_v25, 0.0  ;;  %v380_v16 = vsel %vm379_vm12, 1.0, %v804_v33 }
  0xe3   :  { %719 = vrsqrt.f32 %v371_v14  ;;  %vm374_vm11 = vcmp.eq.f32.partialorder %v371_v14, inf  ;;  %v377_v62 = vand.u32 2147483648, %v371_v14  ;;  %vm376_vm13 = vcmp.eq.f32.partialorder %v371_v14, 0.0 }
  0xe4   :  { %721 = vrsqrt.f32 %v383_v61  ;;  %vm386_vm14 = vcmp.eq.f32.partialorder %v383_v61, inf  ;;  %v389_v12 = vand.u32 2147483648, %v383_v61  ;;  %vm388_vm15 = vcmp.eq.f32.partialorder %v383_v61, 0.0 }
  0xed   :  { %v720_v58 = vpop.eup %719 }
  0xee   :  { %v722_v4 = vpop.eup %721  ;;  %v373_v11 = vmul.f32 %v720_v58, %v371_v14 }
  0xef   :  { %v385_v13 = vmul.f32 %v722_v4, %v383_v61 }
  0xf0   :  { %v375_v15 = vsel %vm374_vm11, %v371_v14, %v373_v11 }
  0xf1   :  { %v378_v18 = vsel %vm376_vm13, %v377_v62, %v375_v15  ;;  %v387_v17 = vsel %vm386_vm14, %v383_v61, %v385_v13 }
  0xf2   :  { %v390_v19 = vsel %vm388_vm15, %v389_v12, %v387_v17  ;;  %v392_v20 = vmul.f32 %v378_v18, %v343_v50  ;;  %v396_v21 = vmul.f32 %v378_v18, %v345_v49  ;;  %v398_v0 = vadd.f32 1.0, %v378_v18 }
  0xf3   :  { %v391_v26 = vmul.f32 %v390_v19, %v380_v16  ;;  %v410_v27 = vsub.f32 1.0, %v378_v18 }
  0xf4   :  { %v399_v30 = vmul.f32 0.5, %v398_v0 }
  0xf5   :  { %v393_v1 = vmul.f32 %v391_v26, %v345_v49  ;;  %v395_v31 = vmul.f32 %v391_v26, %v343_v50  ;;  %v411_v32 = vmul.f32 0.5, %v410_v27  ;;  %vm408_vm3 = vcmp.ge.f32.partialorder %v391_v26, 0.0 }
  0xf6   :  { %v400_v2 = vmax.f32 %v399_v30, 0.0  ;;  %v409_v37 = vsel %vm408_vm3, 1.0, %v804_v33 }
  0xf7   :  { %v394_v40 = vsub.f32 %v392_v20, %v393_v1  ;;  %v397_v41 = vadd.f32 %v396_v21, %v395_v31  ;;  %v412_v3 = vmax.f32 %v411_v32, 0.0 }
  0xf8   :  { %723 = vrsqrt.f32 %v400_v2  ;;  %vm403_vm0 = vcmp.eq.f32.partialorder %v400_v2, inf  ;;  %v406_v43 = vand.u32 2147483648, %v400_v2  ;;  %vm405_vm1 = vcmp.eq.f32.partialorder %v400_v2, 0.0 }
  0xf9   :  { %725 = vrsqrt.f32 %v412_v3  ;;  %vm415_vm2 = vcmp.eq.f32.partialorder %v412_v3, inf  ;;  %v418_v51 = vand.u32 2147483648, %v412_v3  ;;  %vm417_vm4 = vcmp.eq.f32.partialorder %v412_v3, 0.0 }
 0x102   :  { %v724_v42 = vpop.eup %723 }
 0x103   :  { %v402_v44 = vmul.f32 %v724_v42, %v400_v2  ;;  %v726_v46 = vpop.eup %725 }
 0x104   :  { %v414_v38 = vmul.f32 %v726_v46, %v412_v3 }
 0x105   :  { %v404_v45 = vsel %vm403_vm0, %v400_v2, %v402_v44 }
 0x106   :  { %v407_v29 = vsel %vm405_vm1, %v406_v43, %v404_v45  ;;  %v416_v36 = vsel %vm415_vm2, %v412_v3, %v414_v38 }
 0x107   :  { %v421_v47 = vadd.f32 1.0, %v407_v29  ;;  %v433_v48 = vsub.f32 1.0, %v407_v29  ;;  %v419_v53 = vsel %vm417_vm4, %v418_v51, %v416_v36 }
 0x108   :  { %v420_v54 = vmul.f32 %v419_v53, %v409_v37 }
 0x109   :  { %v422_v49 = vmul.f32 0.5, %v421_v47  ;;  %v434_v8 = vmul.f32 0.5, %v433_v48 }
 0x10a   :  { %vm431_vm6 = vcmp.ge.f32.partialorder %v420_v54, 0.0 }
 0x10b   :  { %v423_v9 = vmax.f32 %v422_v49, 0.0  ;;  %v435_v50 = vmax.f32 %v434_v8, 0.0  ;;  %v432_v24 = vsel %vm431_vm6, 1.0, %v804_v33 }
 0x10d   :  { %727 = vrsqrt.f32 %v423_v9  ;;  %vm426_vm5 = vcmp.eq.f32.partialorder %v423_v9, inf  ;;  %v429_v60 = vand.u32 2147483648, %v423_v9  ;;  %vm428_vm7 = vcmp.eq.f32.partialorder %v423_v9, 0.0 }
 0x10e   :  { %729 = vrsqrt.f32 %v435_v50  ;;  %vm438_vm8 = vcmp.eq.f32.partialorder %v435_v50, inf  ;;  %v441_v6 = vand.u32 2147483648, %v435_v50  ;;  %vm440_vm9 = vcmp.eq.f32.partialorder %v435_v50, 0.0 }
 0x117   :  { %v728_v55 = vpop.eup %727 }
 0x118   :  { %v730_v63 = vpop.eup %729  ;;  %v425_v5 = vmul.f32 %v728_v55, %v423_v9 }
 0x119   :  { %v437_v35 = vmul.f32 %v730_v63, %v435_v50 }
 0x11a   :  { %v427_v52 = vsel %vm426_vm5, %v423_v9, %v425_v5 }
 0x11b   :  { %v430_v57 = vsel %vm428_vm7, %v429_v60, %v427_v52  ;;  %v439_v7 = vsel %vm438_vm8, %v435_v50, %v437_v35 }
 0x11c   :  { %v442_v25 = vsel %vm440_vm9, %v441_v6, %v439_v7  ;;  %v450_v14 = vadd.f32 1.0, %v430_v57  ;;  %v444_v58 = vmul.f32 %v430_v57, %v394_v40  ;;  %v448_v62 = vmul.f32 %v430_v57, %v397_v41 }
 0x11d   :  { %v443_v61 = vmul.f32 %v442_v25, %v432_v24  ;;  %v462_v4 = vsub.f32 1.0, %v430_v57 }
 0x11e   :  { %v451_v11 = vmul.f32 0.5, %v450_v14 }
 0x11f   :  { %v445_v12 = vmul.f32 %v443_v61, %v397_v41  ;;  %v447_v13 = vmul.f32 %v443_v61, %v394_v40  ;;  %v463_v15 = vmul.f32 0.5, %v462_v4  ;;  %vm460_vm14 = vcmp.ge.f32.partialorder %v443_v61, 0.0 }
 0x120   :  { %v452_v16 = vmax.f32 %v451_v11, 0.0  ;;  %v461_v46 = vsel %vm460_vm14, 1.0, %v804_v33 }
 0x121   :  { %v446_v18 = vsub.f32 %v444_v58, %v445_v12  ;;  %v449_v17 = vadd.f32 %v448_v62, %v447_v13  ;;  %v464_v19 = vmax.f32 %v463_v15, 0.0 }
 0x122   :  { %731 = vrsqrt.f32 %v452_v16  ;;  %vm455_vm11 = vcmp.eq.f32.partialorder %v452_v16, inf  ;;  %v458_v21 = vand.u32 2147483648, %v452_v16  ;;  %vm457_vm12 = vcmp.eq.f32.partialorder %v452_v16, 0.0 }
 0x123   :  { %733 = vrsqrt.f32 %v464_v19  ;;  %vm467_vm13 = vcmp.eq.f32.partialorder %v464_v19, inf  ;;  %v470_v44 = vand.u32 2147483648, %v464_v19  ;;  %vm469_vm15 = vcmp.eq.f32.partialorder %v464_v19, 0.0 }
 0x124   :  { %735 = vlog2.f32 %v952_v59 }
 0x12c   :  { %v732_v20 = vpop.eup %731 }
 0x12d   :  { %v454_v0 = vmul.f32 %v732_v20, %v452_v16  ;;  %v734_v27 = vpop.eup %733 }
 0x12e   :  { %v736_v1 = vpop.eup %735  ;;  %v466_v2 = vmul.f32 %v734_v27, %v464_v19 }
 0x12f   :  { %v456_v26 = vsel %vm455_vm11, %v452_v16, %v454_v0  ;;  %v503_v3 = vmul.f32 0.6931472, %v736_v1 }
 0x130   :  { %v459_v30 = vsel %vm457_vm12, %v458_v21, %v456_v26  ;;  %v468_v59 = vsel %vm467_vm13, %v464_v19, %v466_v2 }
 0x131   :  { %v473_v31 = vadd.f32 1.0, %v459_v30  ;;  %v485_v32 = vsub.f32 1.0, %v459_v30  ;;  %v504_v45 = vmul.f32 0.33333334, %v503_v3  ;;  %v471_v29 = vsel %vm469_vm15, %v470_v44, %v468_v59 }
 0x132   :  { %v472_v48 = vmul.f32 %v471_v29, %v461_v46 }
 0x133   :  { %v474_v40 = vmul.f32 0.5, %v473_v31  ;;  %v486_v41 = vmul.f32 0.5, %v485_v32  ;;  %v505_v47 = vmul.f32 1.442695, %v504_v45 }
 0x134   :  { %vm483_vm1 = vcmp.ge.f32.partialorder %v472_v48, 0.0 }
 0x135   :  { %v475_v42 = vmax.f32 %v474_v40, 0.0  ;;  %v487_v43 = vmax.f32 %v486_v41, 0.0  ;;  %v484_v37 = vsel %vm483_vm1, 1.0, %v804_v33 }
 0x137   :  { %737 = vrsqrt.f32 %v475_v42  ;;  %vm478_vm0 = vcmp.eq.f32.partialorder %v475_v42, inf  ;;  %v481_v49 = vand.u32 2147483648, %v475_v42  ;;  %vm480_vm2 = vcmp.eq.f32.partialorder %v475_v42, 0.0 }
 0x138   :  { %739 = vrsqrt.f32 %v487_v43  ;;  %vm490_vm3 = vcmp.eq.f32.partialorder %v487_v43, inf  ;;  %v493_v50 = vand.u32 2147483648, %v487_v43  ;;  %vm492_vm4 = vcmp.eq.f32.partialorder %v487_v43, 0.0 }
 0x139   :  { %741 = vpow2.f32 %v505_v47 }
 0x141   :  { %v738_v38 = vpop.eup %737 }
 0x142   :  { %v740_v8 = vpop.eup %739  ;;  %v477_v9 = vmul.f32 %v738_v38, %v475_v42 }
 0x143   :  { %v489_v51 = vmul.f32 %v740_v8, %v487_v43  ;;  %v742_v52 = vpop.eup %741 }
 0x144   :  { %v479_v36 = vsel %vm478_vm0, %v475_v42, %v477_v9 }
 0x145   :  { %v482_v53 = vsel %vm480_vm2, %v481_v49, %v479_v36  ;;  %v491_v54 = vsel %vm490_vm3, %v487_v43, %v489_v51 }
 0x146   :  { %v494_v55 = vsel %vm492_vm4, %v493_v50, %v491_v54  ;;  %v496_v63 = vmul.f32 %v482_v53, %v446_v18  ;;  %v500_v5 = vmul.f32 %v482_v53, %v449_v17 }
 0x147   :  { %v495_v60 = vmul.f32 %v494_v55, %v484_v37 }
 0x149   :  { %v497_v6 = vmul.f32 %v495_v60, %v449_v17  ;;  %v499_v35 = vmul.f32 %v495_v60, %v446_v18 }
 0x14b   :  { %v498_v24 = vsub.f32 %v496_v63, %v497_v6  ;;  %v501_v57 = vadd.f32 %v500_v5, %v499_v35 }
 0x14d   :  { %v507_v7 = vmul.f32 %v742_v52, %v498_v24  ;;  %v508_v25 = vmul.f32 %v742_v52, %v501_v57 }
 0x14f   :  { %v509_v14 = vmul.f32 %v507_v7, %v507_v7  ;;  %v510_v61 = vmul.f32 %v508_v25, %v508_v25  ;;  %v512_v58 = vmul.f32 %v508_v25, %v507_v7  ;;  %v527_v21 = vmul.f32 2.0, %v507_v7 }
 0x150   :  { %v530_v0 = vmul.f32 2.0, %v508_v25 }
 0x151   :  { %v511_v62 = vsub.f32 %v509_v14, %v510_v61  ;;  %v513_v4 = vadd.f32 %v512_v58, %v512_v58 }
 0x153   :  { %v514_v11 = vmul.f32 %v511_v62, %v511_v62  ;;  %v515_v33 = vmul.f32 %v513_v4, %v513_v4  ;;  %v519_v12 = vmul.f32 %v511_v62, %v938_v22  ;;  %v520_v13 = vmul.f32 %v513_v4, %v940_v23 }
 0x154   :  { %v523_v15 = vmul.f32 %v511_v62, %v940_v23  ;;  %v524_v16 = vmul.f32 %v513_v4, %v938_v22 }
 0x155   :  { %v516_v18 = vadd.f32 %v515_v33, %v514_v11  ;;  %v521_v17 = vadd.f32 %v520_v13, %v519_v12 }
 0x156   :  { %v525_v19 = vsub.f32 %v523_v15, %v524_v16 }
 0x157   :  { %v517_v20 = vmax.f32 %v516_v18, 1e-30 }
 0x159   :  { %743 = vrcp.f32 %v517_v20 }
 0x163   :  { %v744_v26 = vpop.eup %743 }
 0x164   :  { %v522_v27 = vmul.f32 %v744_v26, %v521_v17  ;;  %v526_v30 = vmul.f32 %v744_v26, %v525_v19 }
 0x166   :  { %v528_v1 = vadd.f32 %v527_v21, %v522_v27  ;;  %v531_v31 = vadd.f32 %v530_v0, %v526_v30 }
 0x168   :  { %v529_v32 = vmul.f32 0.33333334, %v528_v1  ;;  %v532_v2 = vmul.f32 0.33333334, %v531_v31 }
 0x16a   :  { %v533_v40 = vmul.f32 %v529_v32, %v529_v32  ;;  %v534_v41 = vmul.f32 %v532_v2, %v532_v2  ;;  %v536_v3 = vmul.f32 %v532_v2, %v529_v32  ;;  %v551_v9 = vmul.f32 2.0, %v529_v32 }
 0x16b   :  { %v554_v50 = vmul.f32 2.0, %v532_v2 }
 0x16c   :  { %v535_v42 = vsub.f32 %v533_v40, %v534_v41  ;;  %v537_v43 = vadd.f32 %v536_v3, %v536_v3 }
 0x16e   :  { %v538_v44 = vmul.f32 %v535_v42, %v535_v42  ;;  %v539_v59 = vmul.f32 %v537_v43, %v537_v43  ;;  %v543_v45 = vmul.f32 %v535_v42, %v938_v22  ;;  %v544_v46 = vmul.f32 %v537_v43, %v940_v23 }
 0x16f   :  { %v547_v29 = vmul.f32 %v535_v42, %v940_v23  ;;  %v548_v47 = vmul.f32 %v537_v43, %v938_v22 }
 0x170   :  { %v540_v48 = vadd.f32 %v539_v59, %v538_v44  ;;  %v545_v38 = vadd.f32 %v544_v46, %v543_v45 }
 0x171   :  { %v549_v49 = vsub.f32 %v547_v29, %v548_v47 }
 0x172   :  { %v541_v8 = vmax.f32 %v540_v48, 1e-30 }
 0x174   :  { %745 = vrcp.f32 %v541_v8  ;;  %v608_v8 = vsub.f32 0.0, %v925_v39 }
 0x17e   :  { %v746_v51 = vpop.eup %745 }
 0x17f   :  { %v546_v36 = vmul.f32 %v746_v51, %v545_v38  ;;  %v550_v37 = vmul.f32 %v746_v51, %v549_v49  ;;  %v607_v49 = vsub.f32 0.0, %v923_v28 }
 0x181   :  { %v552_v53 = vadd.f32 %v551_v9, %v546_v36  ;;  %v555_v54 = vadd.f32 %v554_v50, %v550_v37 }
 0x183   :  { %v553_v55 = vmul.f32 0.33333334, %v552_v53  ;;  %v556_v60 = vmul.f32 0.33333334, %v555_v54 }
 0x185   :  { %v557_v63 = vmul.f32 %v553_v55, %v553_v55  ;;  %v558_v5 = vmul.f32 %v556_v60, %v556_v60  ;;  %v560_v6 = vmul.f32 %v556_v60, %v553_v55  ;;  %v575_v33 = vmul.f32 2.0, %v553_v55 }
 0x186   :  { %v578_v12 = vmul.f32 2.0, %v556_v60 }
 0x187   :  { %v559_v35 = vsub.f32 %v557_v63, %v558_v5  ;;  %v561_v52 = vadd.f32 %v560_v6, %v560_v6 }
 0x189   :  { %v562_v24 = vmul.f32 %v559_v35, %v559_v35  ;;  %v563_v57 = vmul.f32 %v561_v52, %v561_v52  ;;  %v567_v7 = vmul.f32 %v559_v35, %v938_v22  ;;  %v568_v25 = vmul.f32 %v561_v52, %v940_v23 }
 0x18a   :  { %v571_v14 = vmul.f32 %v559_v35, %v940_v23  ;;  %v572_v61 = vmul.f32 %v561_v52, %v938_v22 }
 0x18b   :  { %v564_v58 = vadd.f32 %v563_v57, %v562_v24  ;;  %v569_v62 = vadd.f32 %v568_v25, %v567_v7 }
 0x18c   :  { %v573_v4 = vsub.f32 %v571_v14, %v572_v61 }
 0x18d   :  { %v565_v11 = vmax.f32 %v564_v58, 1e-30 }
 0x18f   :  { %747 = vrcp.f32 %v565_v11 }
 0x199   :  { %v748_v13 = vpop.eup %747 }
 0x19a   :  { %v570_v15 = vmul.f32 %v748_v13, %v569_v62  ;;  %v574_v16 = vmul.f32 %v748_v13, %v573_v4  ;;  %v628_v62 = vsub.f32 0.0, %v905_v34  ;;  %v630_v4 = vsub.f32 0.0, %v907_v10 }
 0x19c   :  { %v576_v18 = vadd.f32 %v575_v33, %v570_v15  ;;  %v579_v17 = vadd.f32 %v578_v12, %v574_v16  ;;  %v629_v13 = vmul.f32 0.33333334, %v628_v62  ;;  %v631_v15 = vmul.f32 0.33333334, %v630_v4 }
 0x19e   :  { %v577_v19 = vmul.f32 0.33333334, %v576_v18  ;;  %v580_v20 = vmul.f32 0.33333334, %v579_v17 }
 0x1a0   :  { %v581_v21 = vmul.f32 %v577_v19, %v577_v19  ;;  %v582_v0 = vmul.f32 %v580_v20, %v580_v20  ;;  %v584_v26 = vmul.f32 %v580_v20, %v577_v19  ;;  %v599_v59 = vmul.f32 2.0, %v577_v19 }
 0x1a1   :  { %v602_v45 = vmul.f32 2.0, %v580_v20 }
 0x1a2   :  { %v583_v27 = vsub.f32 %v581_v21, %v582_v0  ;;  %v585_v30 = vadd.f32 %v584_v26, %v584_v26 }
 0x1a4   :  { %v586_v1 = vmul.f32 %v583_v27, %v583_v27  ;;  %v587_v31 = vmul.f32 %v585_v30, %v585_v30  ;;  %v591_v32 = vmul.f32 %v583_v27, %v938_v22  ;;  %v592_v2 = vmul.f32 %v585_v30, %v940_v23 }
 0x1a5   :  { %v595_v40 = vmul.f32 %v583_v27, %v940_v23  ;;  %v596_v41 = vmul.f32 %v585_v30, %v938_v22 }
 0x1a6   :  { %v588_v3 = vadd.f32 %v587_v31, %v586_v1  ;;  %v593_v42 = vadd.f32 %v592_v2, %v591_v32 }
 0x1a7   :  { %v597_v43 = vsub.f32 %v595_v40, %v596_v41 }
 0x1a8   :  { %v589_v44 = vmax.f32 %v588_v3, 1e-30 }
 0x1aa   :  { %749 = vrcp.f32 %v589_v44 }
 0x1b4   :  { %v750_v46 = vpop.eup %749 }
 0x1b5   :  { %v594_v29 = vmul.f32 %v750_v46, %v593_v42  ;;  %v598_v47 = vmul.f32 %v750_v46, %v597_v43 }
 0x1b7   :  { %v600_v48 = vadd.f32 %v599_v59, %v594_v29  ;;  %v603_v38 = vadd.f32 %v602_v45, %v598_v47 }
 0x1b9   :  { %v601_v9 = vmul.f32 0.33333334, %v600_v48  ;;  %v604_v23 = vmul.f32 0.33333334, %v603_v38 }
 0x1bb   :  { %v605_v22 = vsel %vm291_vm10, %v601_v9, 0.0  ;;  %v606_v50 = vsel %vm291_vm10, %v604_v23, 0.0 }
 0x1bc   :  { %v609_v51 = vmul.f32 %v605_v22, %v605_v22  ;;  %v610_v36 = vmul.f32 %v606_v50, %v606_v50  ;;  %v615_v37 = vmul.f32 %v607_v49, %v605_v22  ;;  %v616_v53 = vmul.f32 %v608_v8, %v606_v50 }
 0x1bd   :  { %v619_v54 = vmul.f32 %v608_v8, %v605_v22  ;;  %v620_v55 = vmul.f32 %v607_v49, %v606_v50 }
 0x1be   :  { %v611_v60 = vadd.f32 %v610_v36, %v609_v51  ;;  %v617_v63 = vadd.f32 %v616_v53, %v615_v37 }
 0x1bf   :  { %v621_v5 = vsub.f32 %v619_v54, %v620_v55 }
 0x1c0   :  { %v612_v28 = vmax.f32 %v611_v60, 1e-30  ;;  %vm623_vm5 = vcmp.lt.f32.partialorder %v611_v60, 1e-20 }
 0x1c1   :  { %v624_v39 = vsel %vm623_vm5, 0.0, %v605_v22  ;;  %v625_v6 = vsel %vm623_vm5, 0.0, %v606_v50 }
 0x1c2   :  { %751 = vrcp.f32 %v612_v28  ;;  %v636_v35 = vmul.f32 -0.5, %v624_v39  ;;  %v637_v52 = vmul.f32 0.8660254, %v625_v6  ;;  %v639_v56 = vmul.f32 0.8660254, %v624_v39 }
 0x1c3   :  { %v640_v24 = vmul.f32 -0.5, %v625_v6  ;;  %v652_v57 = vmul.f32 -0.8660254, %v625_v6  ;;  %v654_v7 = vmul.f32 -0.8660254, %v624_v39 }
 0x1c4   :  { %v638_v25 = vsub.f32 %v636_v35, %v637_v52 }
 0x1c5   :  { %v641_v14 = vadd.f32 %v640_v24, %v639_v56  ;;  %v653_v61 = vsub.f32 %v636_v35, %v652_v57  ;;  %v655_v58 = vadd.f32 %v654_v7, %v640_v24 }
 0x1cc   :  { %v752_v11 = vpop.eup %751 }
 0x1cd   :  { %v618_v33 = vmul.f32 %v752_v11, %v617_v63  ;;  %v622_v12 = vmul.f32 %v752_v11, %v621_v5 }
 0x1cf   :  { %v626_v16 = vsel %vm623_vm5, 0.0, %v618_v33  ;;  %v627_v18 = vsel %vm623_vm5, 0.0, %v622_v12 }
 0x1d0   :  { %v632_v17 = vadd.f32 %v626_v16, %v624_v39  ;;  %v634_v19 = vadd.f32 %v627_v18, %v625_v6  ;;  %v642_v20 = vmul.f32 -0.5, %v626_v16  ;;  %v643_v21 = vmul.f32 -0.8660254, %v627_v18 }
 0x1d1   :  { %v645_v0 = vmul.f32 -0.8660254, %v626_v16  ;;  %v646_v26 = vmul.f32 -0.5, %v627_v18  ;;  %v656_v27 = vmul.f32 0.8660254, %v627_v18 }
 0x1d2   :  { %v633_v30 = vadd.f32 %v632_v17, %v629_v13  ;;  %v635_v34 = vadd.f32 %v634_v19, %v631_v15  ;;  %v644_v1 = vsub.f32 %v642_v20, %v643_v21  ;;  %v658_v10 = vmul.f32 0.8660254, %v626_v16 }
 0x1d3   :  { %v647_v31 = vadd.f32 %v646_v26, %v645_v0  ;;  %v657_v32 = vsub.f32 %v642_v20, %v656_v27 }
 0x1d4   :  { %v648_v2 = vadd.f32 %v644_v1, %v638_v25  ;;  %v659_v40 = vadd.f32 %v658_v10, %v646_v26  ;;  %664 = vst [vmem:[#allocation5] sm:$0xff] %v633_v30  ;;  %670 = vst [vmem:[#allocation5 + $0x18] sm:$0xff] %v635_v34 }
 0x1d5   :  { %v650_v41 = vadd.f32 %v647_v31, %v641_v14  ;;  %v660_v3 = vadd.f32 %v657_v32, %v653_v61 }
 0x1d6   :  { %v649_v42 = vadd.f32 %v648_v2, %v629_v13  ;;  %v662_v43 = vadd.f32 %v659_v40, %v655_v58 }
 0x1d7   :  { %v651_v44 = vadd.f32 %v650_v41, %v631_v15  ;;  %v661_v59 = vadd.f32 %v660_v3, %v629_v13 }
 0x1d8   :  { %v663_v45 = vadd.f32 %v662_v43, %v631_v15  ;;  %666 = vst [vmem:[#allocation5 + $0x8] sm:$0xff] %v649_v42 }
 0x1d9   :  { %668 = vst [vmem:[#allocation5 + $0x10] sm:$0xff] %v661_v59  ;;  %672 = vst [vmem:[#allocation5 + $0x20] sm:$0xff] %v651_v44 }
 0x1da   :  { %674 = vst [vmem:[#allocation5 + $0x28] sm:$0xff] %v663_v45 }
 0x1db   :  { %786 = shalt.err (!%p783_p12)
}
 0x1dc   :  { %s787_s24 = scalar_lea.hbm %s1010_s1, 768 }
 0x1dd   :  { %p788_p13 = scmp.ne.s32.totalorder %s1010_s1, %s787_s24  ;;  %p791_p0 = scmp.lt.u32.totalorder %s787_s24, %s1010_s1 }
 0x1df   :  { %p793_p1 = pnand %p791_p0, %p788_p13 }
 0x1e1   :  { %796 = shalt.err (!%p793_p1)
}
 0x1e2   :  { %686 = dma.vmem_to_hbm [thread:$0]  %s681_s20, 768, %s1010_s1, [#allocation4], %s802_s16, %s802_s16, %s803_s17  }
 0x1e3   :  { %799 = dma.done.wait [#allocation4], 768  }
 0x1e4   :  { %800 = vsyncadd [#allocation4], 4294966528 }
 0x1e5   :  { %690 = vsyncpa [#allocation3], 1 }
 0x1e6   :  { %691 = vsyncpa [#allocation4], 1 }

</bundles_post_ra>
